<compile_context>
chip_gen: v6e
topology: v6e:2x2x1
jax: 0.10.0
libtpu: 0.0.40
codegen_flags: <defaults>
</compile_context>

<pallas_src>
import jax
import jax.numpy as jnp
from jax import lax
from jax.experimental import pallas as pl
from jax.experimental.pallas import tpu as pltpu

# ----------------------------- model config (small, synthetic) -----------------
BATCH = 2
SEQ = 8
HIDDEN = 32
NUM_HEADS = 4
HEAD_DIM = HIDDEN // NUM_HEADS
INTERMEDIATE = 64
NUM_LAYERS = 2
VOCAB = 100
MAX_POS = 16
TYPE_VOCAB = 2
USE_LEXICON = True
CLS_DIM = HIDDEN + (1 if USE_LEXICON else 0)
LN_EPS = 1e-12

# rows inside the packed constants array
_R_STATIC_EMB = 0                      # rows [0, B*S): pos+type embedding slab
_R_EMB_LN_G = BATCH * SEQ
_R_EMB_LN_B = BATCH * SEQ + 1
_R_POOL_B = BATCH * SEQ + 2
_R_HEAD_WX = BATCH * SEQ + 3           # lexicon weight row of fused head (first 3 lanes)
_R_HEAD_B = BATCH * SEQ + 4            # fused head bias (first 3 lanes)

# rows inside the packed per-layer vector array (NUM_LAYERS, 8, 128)
_LV_BQKV, _LV_BO, _LV_LN1G, _LV_LN1B, _LV_BI, _LV_BF, _LV_LN2G, _LV_LN2B = range(8)


# ----------------------------- in-kernel helpers --------------------------------
def _layer_norm(x, g, b, eps=LN_EPS):
    mean = jnp.mean(x, axis=-1, keepdims=True)
    xc = x - mean
    var = jnp.mean(xc * xc, axis=-1, keepdims=True)
    return xc * lax.rsqrt(var + eps) * g + b


def _gelu(x):
    # tanh-approximate GELU (EUP tanh).
    return 0.5 * x * (1.0 + jnp.tanh(0.7978845608028654 * (x + 0.044715 * x * x * x)))


# ----------------------------- the single fused kernel --------------------------
def _fused_forward_kernel(
    ids_ref, mask_ref, lex_ref,
    word_emb_ref, consts_ref,
    wqkv_ref, wo_ref, wi_ref, wf_ref, lvec_ref,
    pool_w_ref, head_w_h_ref,
    out_ref,
):
    B, S, H, NH, HD, I = BATCH, SEQ, HIDDEN, NUM_HEADS, HEAD_DIM, INTERMEDIATE
    BS = B * S

    # -------- embeddings: gather folded in as a one-hot MXU matmul --------
    ids = ids_ref[...]                                                    # (BS, 1) int32
    vocab_iota = lax.broadcasted_iota(jnp.int32, (BS, VOCAB), 1)
    onehot = (vocab_iota == ids).astype(jnp.float32)                      # (BS, VOCAB)
    emb = jnp.dot(onehot, word_emb_ref[...], preferred_element_type=jnp.float32)
    emb = emb + consts_ref[_R_STATIC_EMB:BS, :]                           # + pos/type emb

    h = _layer_norm(emb,
                    consts_ref[_R_EMB_LN_G:_R_EMB_LN_G + 1, :],
                    consts_ref[_R_EMB_LN_B:_R_EMB_LN_B + 1, :])           # (BS, H)

    # additive attention mask, built & broadcast once, reused by every layer/head
    mask_add = (1.0 - mask_ref[...].astype(jnp.float32)) * -1e9           # (B, S)
    mask_add = mask_add[:, None, :]                                       # (B, 1, S)

    # -------- encoder: statically unrolled layer loop, all in VMEM --------
    for l in range(NUM_LAYERS):
        lv = lvec_ref[l]                                                  # (8, 128)

        # fused Q|K|V projection; Q weights/bias pre-scaled by 1/sqrt(HD) at pack time
        qkv = jnp.dot(h, wqkv_ref[l], preferred_element_type=jnp.float32)
        qkv = qkv + lv[_LV_BQKV:_LV_BQKV + 1, 0:3 * H]                    # (BS, 3H)

        heads = []
        for hh in range(NH):
            q_h = qkv[:, hh * HD:(hh + 1) * HD].reshape(B, S, HD)
            k_h = qkv[:, H + hh * HD:H + (hh + 1) * HD].reshape(B, S, HD)
            v_h = qkv[:, 2 * H + hh * HD:2 * H + (hh + 1) * HD].reshape(B, S, HD)
            # batched over batch dim (documented Mosaic-safe einsum form)
            s = jnp.einsum('bqd,bkd->bqk', q_h, k_h,
                           preferred_element_type=jnp.float32) + mask_add
            s = s - jnp.max(s, axis=-1, keepdims=True)
            p = jnp.exp(s)
            p = p / jnp.sum(p, axis=-1, keepdims=True)
            ctx_h = jnp.einsum('bqk,bkd->bqd', p, v_h,
                               preferred_element_type=jnp.float32)        # (B, S, HD)
            heads.append(ctx_h.reshape(BS, HD))
        ctx = jnp.concatenate(heads, axis=1)                              # (BS, H)

        # attention output projection + residual + LayerNorm
        attn = jnp.dot(ctx, wo_ref[l], preferred_element_type=jnp.float32)
        attn = attn + lv[_LV_BO:_LV_BO + 1, 0:H]
        h1 = _layer_norm(h + attn, lv[_LV_LN1G:_LV_LN1G + 1, 0:H],
                         lv[_LV_LN1B:_LV_LN1B + 1, 0:H])

        # FFN (GELU) + residual + LayerNorm
        ff = jnp.dot(h1, wi_ref[l], preferred_element_type=jnp.float32)
        ff = _gelu(ff + lv[_LV_BI:_LV_BI + 1, 0:I])
        ff = jnp.dot(ff, wf_ref[l], preferred_element_type=jnp.float32)
        ff = ff + lv[_LV_BF:_LV_BF + 1, 0:H]
        h = _layer_norm(h1 + ff, lv[_LV_LN2G:_LV_LN2G + 1, 0:H],
                        lv[_LV_LN2B:_LV_LN2B + 1, 0:H])

    # -------- pooler on [CLS] rows + fused classification/regression heads --------
    cls = h.reshape(B, S, H)[:, 0, :]                                     # (B, H)
    pooled = jnp.tanh(jnp.dot(cls, pool_w_ref[...],
                              preferred_element_type=jnp.float32)
                      + consts_ref[_R_POOL_B:_R_POOL_B + 1, :])
    # dropout(0.3) == identity in eval mode.
    # combined = [pooled | lexicon]; heads fused into one (H+1, 3) weight, expressed as
    # pooled @ W[:H] + lex * W[H:] to avoid an odd-K matmul.
    head = jnp.dot(pooled, head_w_h_ref[...], preferred_element_type=jnp.float32)
    head = head + lex_ref[...] * consts_ref[_R_HEAD_WX:_R_HEAD_WX + 1, 0:3]
    head = head + consts_ref[_R_HEAD_B:_R_HEAD_B + 1, 0:3]                # (B, 3)
    out_ref[...] = head.astype(out_ref.dtype)


# ----------------------------- parameter init & packing --------------------------
def init_params(key):
    def nrm(key, shape, scale=0.02):
        return scale * jax.random.normal(key, shape, dtype=jnp.float32)

    keys = iter(jax.random.split(key, 128))
    params = {
        "word_emb": nrm(next(keys), (VOCAB, HIDDEN)),
        "pos_emb": nrm(next(keys), (MAX_POS, HIDDEN)),
        "type_emb": nrm(next(keys), (TYPE_VOCAB, HIDDEN)),
        "emb_ln_g": jnp.ones((HIDDEN,), jnp.float32),
        "emb_ln_b": jnp.zeros((HIDDEN,), jnp.float32),
        "layers": [],
        "pool_w": nrm(next(keys), (HIDDEN, HIDDEN)),
        "pool_b": jnp.zeros((HIDDEN,), jnp.float32),
        "cls_w": nrm(next(keys), (CLS_DIM, 2)),
        "cls_b": jnp.zeros((2,), jnp.float32),
        "reg_w": nrm(next(keys), (CLS_DIM, 1)),
        "reg_b": jnp.zeros((1,), jnp.float32),
    }
    for _ in range(NUM_LAYERS):
        params["layers"].append({
            "wq": nrm(next(keys), (HIDDEN, HIDDEN)), "bq": jnp.zeros((HIDDEN,), jnp.float32),
            "wk": nrm(next(keys), (HIDDEN, HIDDEN)), "bk": jnp.zeros((HIDDEN,), jnp.float32),
            "wv": nrm(next(keys), (HIDDEN, HIDDEN)), "bv": jnp.zeros((HIDDEN,), jnp.float32),
            "wo": nrm(next(keys), (HIDDEN, HIDDEN)), "bo": jnp.zeros((HIDDEN,), jnp.float32),
            "ln1_g": jnp.ones((HIDDEN,), jnp.float32), "ln1_b": jnp.zeros((HIDDEN,), jnp.float32),
            "wi": nrm(next(keys), (HIDDEN, INTERMEDIATE)), "bi": jnp.zeros((INTERMEDIATE,), jnp.float32),
            "wf": nrm(next(keys), (INTERMEDIATE, HIDDEN)), "bf": jnp.zeros((HIDDEN,), jnp.float32),
            "ln2_g": jnp.ones((HIDDEN,), jnp.float32), "ln2_b": jnp.zeros((HIDDEN,), jnp.float32),
        })
    return params


def pack_params(params):
    """Fuse QKV (Q pre-scaled), fuse heads, and pack all small vectors into 2 arrays."""
    layers = params["layers"]
    scale = 1.0 / float(HEAD_DIM) ** 0.5

    def pad128(v):
        return jnp.pad(v, (0, 128 - v.shape[0]))

    def padH(v):
        return jnp.pad(v, (0, HIDDEN - v.shape[0]))

    # (L, H, 3H) fused QKV, with the attention scale folded into Q weights + bias.
    wqkv = jnp.stack(
        [jnp.concatenate([p["wq"] * scale, p["wk"], p["wv"]], axis=1) for p in layers])

    # (L, 8, 128): every per-layer bias / LayerNorm vector as one padded row.
    lvec = jnp.stack([
        jnp.stack([
            pad128(jnp.concatenate([p["bq"] * scale, p["bk"], p["bv"]])),  # bqkv (96)
            pad128(p["bo"]),
            pad128(p["ln1_g"]),
            pad128(p["ln1_b"]),
            pad128(p["bi"]),                                               # (64)
            pad128(p["bf"]),
            pad128(p["ln2_g"]),
            pad128(p["ln2_b"]),
        ]) for p in layers
    ])

    # fused classification+regression head: (CLS_DIM, 3)
    head_w = jnp.concatenate([params["cls_w"], params["reg_w"]], axis=1)
    head_b = jnp.concatenate([params["cls_b"], params["reg_b"]])           # (3,)
    lex_row = head_w[HIDDEN, :] if USE_LEXICON else jnp.zeros((3,), jnp.float32)

    # position + token-type embedding slab (token_type_ids assumed all zero).
    static_emb = (jnp.tile(params["pos_emb"][:SEQ], (BATCH, 1))
                  + params["type_emb"][0][None, :])                       # (B*S, H)

    consts = jnp.concatenate([
        static_emb,                                                        # rows 0..B*S-1
        params["emb_ln_g"][None, :],
        params["emb_ln_b"][None, :],
        params["pool_b"][None, :],
        padH(lex_row)[None, :],
        padH(head_b)[None, :],
    ], axis=0)                                                             # (B*S+5, H)

    return {
        "word_emb": params["word_emb"],
        "consts": consts,
        "wqkv": wqkv,
        "wo": jnp.stack([p["wo"] for p in layers]),
        "wi": jnp.stack([p["wi"] for p in layers]),
        "wf": jnp.stack([p["wf"] for p in layers]),
        "lvec": lvec,
        "pool_w": params["pool_w"],
        "head_w_h": head_w[:HIDDEN, :],                                    # (H, 3)
    }


# ----------------------------- forward pass -------------------------------------
@jax.jit
def multitask_forward(packed, input_ids, attention_mask, lexicon_feat):
    B, S = input_ids.shape

    ordered = [
        input_ids.reshape(B * S, 1).astype(jnp.int32),   # gather done inside the kernel
        attention_mask.astype(jnp.int32),
        lexicon_feat.astype(jnp.float32),
        packed["word_emb"], packed["consts"],
        packed["wqkv"], packed["wo"], packed["wi"], packed["wf"], packed["lvec"],
        packed["pool_w"], packed["head_w_h"],
    ]

    vmem = pl.BlockSpec(memory_space=pltpu.MemorySpace.VMEM)
    out = pl.pallas_call(
        _fused_forward_kernel,
        out_shape=jax.ShapeDtypeStruct((B, 3), jnp.float32),
        in_specs=[vmem] * len(ordered),
        out_specs=vmem,
    )(*ordered)

    logits = out[:, 0:2]
    reg = out[:, 2]
    return logits, reg


# ----------------------------- main ----------------------------------------------
if __name__ == "__main__":
    key = jax.random.PRNGKey(0)
    k_param, k_ids, k_lex = jax.random.split(key, 3)

    params = init_params(k_param)
    packed = pack_params(params)

    input_ids = jax.random.randint(k_ids, (BATCH, SEQ), 0, VOCAB, dtype=jnp.int32)
    attention_mask = jnp.ones((BATCH, SEQ), dtype=jnp.int32).at[:, SEQ - 2:].set(0)
    lexicon_feat = jax.random.uniform(k_lex, (BATCH, 1), dtype=jnp.float32)

    logits, reg = multitask_forward(packed, input_ids, attention_mask, lexicon_feat)
    jax.block_until_ready((logits, reg))

    assert logits.shape == (BATCH, 2) and reg.shape == (BATCH,)
    assert bool(jnp.all(jnp.isfinite(logits))) and bool(jnp.all(jnp.isfinite(reg)))
    print("KERNEL_OK")
</pallas_src>

<mosaic_0001>
module attributes {stable_mosaic.version = 11 : i64} {
  func.func @_fused_forward_kernel(%arg0: memref<16x1xi32, #tpu.memory_space<vmem>>, %arg1: memref<2x8xi32, #tpu.memory_space<vmem>>, %arg2: memref<2x1xf32, #tpu.memory_space<vmem>>, %arg3: memref<100x32xf32, #tpu.memory_space<vmem>>, %arg4: memref<21x32xf32, #tpu.memory_space<vmem>>, %arg5: memref<2x32x96xf32, #tpu.memory_space<vmem>>, %arg6: memref<2x32x32xf32, #tpu.memory_space<vmem>>, %arg7: memref<2x32x64xf32, #tpu.memory_space<vmem>>, %arg8: memref<2x64x32xf32, #tpu.memory_space<vmem>>, %arg9: memref<2x8x128xf32, #tpu.memory_space<vmem>>, %arg10: memref<32x32xf32, #tpu.memory_space<vmem>>, %arg11: memref<32x3xf32, #tpu.memory_space<vmem>>, %arg12: memref<2x3xf32, #tpu.memory_space<vmem>>) attributes {dimension_semantics = [], scalar_prefetch = 0 : i64, scratch_operands = 0 : i64, tpu.core_type = #tpu.core_type<tc>} {
    %c0 = arith.constant 0 : index
    %c0_0 = arith.constant 0 : index
    %0 = vector.load %arg0[%c0, %c0_0] : memref<16x1xi32, #tpu.memory_space<vmem>>, vector<16x1xi32>
    %1 = tpu.iota {dimensions = array<i32: 1>} : vector<16x100xi32>
    %2 = vector.broadcast %0 : vector<16x1xi32> to vector<16x100xi32>
    %3 = arith.cmpi eq, %1, %2 : vector<16x100xi32>
    %4 = arith.extui %3 : vector<16x100xi1> to vector<16x100xi32>
    %5 = arith.sitofp %4 : vector<16x100xi32> to vector<16x100xf32>
    %c0_1 = arith.constant 0 : index
    %c0_2 = arith.constant 0 : index
    %6 = vector.load %arg3[%c0_1, %c0_2] : memref<100x32xf32, #tpu.memory_space<vmem>>, vector<100x32xf32>
    %cst = arith.constant dense<0.000000e+00> : vector<16x32xf32>
    %7 = tpu.matmul %5, %6, %cst {dimension_numbers = #tpu.dot_dimension_numbers<[1], [0], [0], [1], [0, 0, 1, 1], [], []>} : vector<16x100xf32>, vector<100x32xf32>, vector<16x32xf32> -> vector<16x32xf32>
    %c0_3 = arith.constant 0 : index
    %c0_4 = arith.constant 0 : index
    %8 = vector.load %arg4[%c0_3, %c0_4] : memref<21x32xf32, #tpu.memory_space<vmem>>, vector<16x32xf32>
    %9 = arith.addf %7, %8 : vector<16x32xf32>
    %c16 = arith.constant 16 : index
    %c0_5 = arith.constant 0 : index
    %10 = vector.load %arg4[%c16, %c0_5] : memref<21x32xf32, #tpu.memory_space<vmem>>, vector<1x32xf32>
    %c17 = arith.constant 17 : index
    %c0_6 = arith.constant 0 : index
    %11 = vector.load %arg4[%c17, %c0_6] : memref<21x32xf32, #tpu.memory_space<vmem>>, vector<1x32xf32>
    %cst_7 = arith.constant dense<0.000000e+00> : vector<16xf32>
    %12 = vector.multi_reduction <add>, %9, %cst_7 [1] : vector<16x32xf32> to vector<16xf32>
    %13 = vector.shape_cast %12 : vector<16xf32> to vector<16x1xf32>
    %cst_8 = arith.constant 3.200000e+01 : f32
    %14 = vector.broadcast %cst_8 : f32 to vector<16x1xf32>
    %15 = arith.divf %13, %14 : vector<16x1xf32>
    %16 = vector.broadcast %15 : vector<16x1xf32> to vector<16x32xf32>
    %17 = arith.subf %9, %16 : vector<16x32xf32>
    %18 = arith.mulf %17, %17 : vector<16x32xf32>
    %cst_9 = arith.constant dense<0.000000e+00> : vector<16xf32>
    %19 = vector.multi_reduction <add>, %18, %cst_9 [1] : vector<16x32xf32> to vector<16xf32>
    %20 = vector.shape_cast %19 : vector<16xf32> to vector<16x1xf32>
    %cst_10 = arith.constant 3.200000e+01 : f32
    %21 = vector.broadcast %cst_10 : f32 to vector<16x1xf32>
    %22 = arith.divf %20, %21 : vector<16x1xf32>
    %cst_11 = arith.constant 9.99999996E-13 : f32
    %23 = vector.broadcast %cst_11 : f32 to vector<16x1xf32>
    %24 = arith.addf %22, %23 : vector<16x1xf32>
    %25 = math.rsqrt %24 : vector<16x1xf32>
    %26 = vector.broadcast %25 : vector<16x1xf32> to vector<16x32xf32>
    %27 = arith.mulf %17, %26 : vector<16x32xf32>
    %28 = vector.broadcast %10 : vector<1x32xf32> to vector<16x32xf32>
    %29 = arith.mulf %27, %28 : vector<16x32xf32>
    %30 = vector.broadcast %11 : vector<1x32xf32> to vector<16x32xf32>
    %31 = arith.addf %29, %30 : vector<16x32xf32>
    %c0_12 = arith.constant 0 : index
    %c0_13 = arith.constant 0 : index
    %32 = vector.load %arg1[%c0_12, %c0_13] : memref<2x8xi32, #tpu.memory_space<vmem>>, vector<2x8xi32>
    %33 = arith.sitofp %32 : vector<2x8xi32> to vector<2x8xf32>
    %cst_14 = arith.constant 1.000000e+00 : f32
    %34 = vector.broadcast %cst_14 : f32 to vector<2x8xf32>
    %35 = arith.subf %34, %33 : vector<2x8xf32>
    %cst_15 = arith.constant -1.000000e+09 : f32
    %36 = vector.broadcast %cst_15 : f32 to vector<2x8xf32>
    %37 = arith.mulf %35, %36 : vector<2x8xf32>
    %38 = vector.shape_cast %37 : vector<2x8xf32> to vector<2x1x8xf32>
    %c0_16 = arith.constant 0 : index
    %c0_17 = arith.constant 0 : index
    %c0_18 = arith.constant 0 : index
    %39 = vector.load %arg9[%c0_16, %c0_17, %c0_18] : memref<2x8x128xf32, #tpu.memory_space<vmem>>, vector<1x8x128xf32>
    %40 = vector.shape_cast %39 : vector<1x8x128xf32> to vector<8x128xf32>
    %c0_19 = arith.constant 0 : index
    %c0_20 = arith.constant 0 : index
    %c0_21 = arith.constant 0 : index
    %41 = vector.load %arg5[%c0_19, %c0_20, %c0_21] : memref<2x32x96xf32, #tpu.memory_space<vmem>>, vector<1x32x96xf32>
    %42 = vector.shape_cast %41 : vector<1x32x96xf32> to vector<32x96xf32>
    %cst_22 = arith.constant dense<0.000000e+00> : vector<16x96xf32>
    %43 = tpu.matmul %31, %42, %cst_22 {dimension_numbers = #tpu.dot_dimension_numbers<[1], [0], [0], [1], [0, 0, 1, 1], [], []>} : vector<16x32xf32>, vector<32x96xf32>, vector<16x96xf32> -> vector<16x96xf32>
    %44 = vector.extract_strided_slice %40 {offsets = [0, 0], sizes = [1, 96], strides = [1, 1]} : vector<8x128xf32> to vector<1x96xf32>
    %45 = vector.broadcast %44 : vector<1x96xf32> to vector<16x96xf32>
    %46 = arith.addf %43, %45 : vector<16x96xf32>
    %47 = vector.extract_strided_slice %46 {offsets = [0, 0], sizes = [16, 8], strides = [1, 1]} : vector<16x96xf32> to vector<16x8xf32>
    %48 = vector.shape_cast %47 : vector<16x8xf32> to vector<2x8x8xf32>
    %49 = vector.extract_strided_slice %46 {offsets = [0, 32], sizes = [16, 8], strides = [1, 1]} : vector<16x96xf32> to vector<16x8xf32>
    %50 = vector.shape_cast %49 : vector<16x8xf32> to vector<2x8x8xf32>
    %51 = vector.extract_strided_slice %46 {offsets = [0, 64], sizes = [16, 8], strides = [1, 1]} : vector<16x96xf32> to vector<16x8xf32>
    %52 = vector.shape_cast %51 : vector<16x8xf32> to vector<2x8x8xf32>
    "tpu.trace_start"() <{level = 10 : i32, message = "bqd,bkd->bqk"}> : () -> ()
    %cst_23 = arith.constant dense<0.000000e+00> : vector<2x8x8xf32>
    %53 = tpu.matmul %48, %50, %cst_23 {dimension_numbers = #tpu.dot_dimension_numbers<[2], [2], [1], [1], [0, 0, 0, 1, 1, 1], [0], [0]>} : vector<2x8x8xf32>, vector<2x8x8xf32>, vector<2x8x8xf32> -> vector<2x8x8xf32>
    "tpu.trace_stop"() : () -> ()
    %54 = vector.broadcast %38 : vector<2x1x8xf32> to vector<2x8x8xf32>
    %55 = arith.addf %53, %54 : vector<2x8x8xf32>
    %cst_24 = arith.constant dense<0xFF800000> : vector<2x8xf32>
    %56 = vector.multi_reduction <maximumf>, %55, %cst_24 [2] : vector<2x8x8xf32> to vector<2x8xf32>
    %57 = vector.shape_cast %56 : vector<2x8xf32> to vector<2x8x1xf32>
    %58 = vector.broadcast %57 : vector<2x8x1xf32> to vector<2x8x8xf32>
    %59 = arith.subf %55, %58 : vector<2x8x8xf32>
    %60 = math.exp %59 : vector<2x8x8xf32>
    %cst_25 = arith.constant dense<0.000000e+00> : vector<2x8xf32>
    %61 = vector.multi_reduction <add>, %60, %cst_25 [2] : vector<2x8x8xf32> to vector<2x8xf32>
    %62 = vector.shape_cast %61 : vector<2x8xf32> to vector<2x8x1xf32>
    %63 = vector.broadcast %62 : vector<2x8x1xf32> to vector<2x8x8xf32>
    %64 = arith.divf %60, %63 : vector<2x8x8xf32>
    "tpu.trace_start"() <{level = 10 : i32, message = "bqk,bkd->bqd"}> : () -> ()
    %cst_26 = arith.constant dense<0.000000e+00> : vector<2x8x8xf32>
    %65 = tpu.matmul %64, %52, %cst_26 {dimension_numbers = #tpu.dot_dimension_numbers<[2], [1], [1], [2], [0, 0, 0, 1, 1, 2], [0], [0]>} : vector<2x8x8xf32>, vector<2x8x8xf32>, vector<2x8x8xf32> -> vector<2x8x8xf32>
    "tpu.trace_stop"() : () -> ()
    %66 = vector.shape_cast %65 : vector<2x8x8xf32> to vector<16x8xf32>
    %67 = vector.extract_strided_slice %46 {offsets = [0, 8], sizes = [16, 8], strides = [1, 1]} : vector<16x96xf32> to vector<16x8xf32>
    %68 = vector.shape_cast %67 : vector<16x8xf32> to vector<2x8x8xf32>
    %69 = vector.extract_strided_slice %46 {offsets = [0, 40], sizes = [16, 8], strides = [1, 1]} : vector<16x96xf32> to vector<16x8xf32>
    %70 = vector.shape_cast %69 : vector<16x8xf32> to vector<2x8x8xf32>
    %71 = vector.extract_strided_slice %46 {offsets = [0, 72], sizes = [16, 8], strides = [1, 1]} : vector<16x96xf32> to vector<16x8xf32>
    %72 = vector.shape_cast %71 : vector<16x8xf32> to vector<2x8x8xf32>
    "tpu.trace_start"() <{level = 10 : i32, message = "bqd,bkd->bqk"}> : () -> ()
    %cst_27 = arith.constant dense<0.000000e+00> : vector<2x8x8xf32>
    %73 = tpu.matmul %68, %70, %cst_27 {dimension_numbers = #tpu.dot_dimension_numbers<[2], [2], [1], [1], [0, 0, 0, 1, 1, 1], [0], [0]>} : vector<2x8x8xf32>, vector<2x8x8xf32>, vector<2x8x8xf32> -> vector<2x8x8xf32>
    "tpu.trace_stop"() : () -> ()
    %74 = vector.broadcast %38 : vector<2x1x8xf32> to vector<2x8x8xf32>
    %75 = arith.addf %73, %74 : vector<2x8x8xf32>
    %cst_28 = arith.constant dense<0xFF800000> : vector<2x8xf32>
    %76 = vector.multi_reduction <maximumf>, %75, %cst_28 [2] : vector<2x8x8xf32> to vector<2x8xf32>
    %77 = vector.shape_cast %76 : vector<2x8xf32> to vector<2x8x1xf32>
    %78 = vector.broadcast %77 : vector<2x8x1xf32> to vector<2x8x8xf32>
    %79 = arith.subf %75, %78 : vector<2x8x8xf32>
    %80 = math.exp %79 : vector<2x8x8xf32>
    %cst_29 = arith.constant dense<0.000000e+00> : vector<2x8xf32>
    %81 = vector.multi_reduction <add>, %80, %cst_29 [2] : vector<2x8x8xf32> to vector<2x8xf32>
    %82 = vector.shape_cast %81 : vector<2x8xf32> to vector<2x8x1xf32>
    %83 = vector.broadcast %82 : vector<2x8x1xf32> to vector<2x8x8xf32>
    %84 = arith.divf %80, %83 : vector<2x8x8xf32>
    "tpu.trace_start"() <{level = 10 : i32, message = "bqk,bkd->bqd"}> : () -> ()
    %cst_30 = arith.constant dense<0.000000e+00> : vector<2x8x8xf32>
    %85 = tpu.matmul %84, %72, %cst_30 {dimension_numbers = #tpu.dot_dimension_numbers<[2], [1], [1], [2], [0, 0, 0, 1, 1, 2], [0], [0]>} : vector<2x8x8xf32>, vector<2x8x8xf32>, vector<2x8x8xf32> -> vector<2x8x8xf32>
    "tpu.trace_stop"() : () -> ()
    %86 = vector.shape_cast %85 : vector<2x8x8xf32> to vector<16x8xf32>
    %87 = vector.extract_strided_slice %46 {offsets = [0, 16], sizes = [16, 8], strides = [1, 1]} : vector<16x96xf32> to vector<16x8xf32>
    %88 = vector.shape_cast %87 : vector<16x8xf32> to vector<2x8x8xf32>
    %89 = vector.extract_strided_slice %46 {offsets = [0, 48], sizes = [16, 8], strides = [1, 1]} : vector<16x96xf32> to vector<16x8xf32>
    %90 = vector.shape_cast %89 : vector<16x8xf32> to vector<2x8x8xf32>
    %91 = vector.extract_strided_slice %46 {offsets = [0, 80], sizes = [16, 8], strides = [1, 1]} : vector<16x96xf32> to vector<16x8xf32>
    %92 = vector.shape_cast %91 : vector<16x8xf32> to vector<2x8x8xf32>
    "tpu.trace_start"() <{level = 10 : i32, message = "bqd,bkd->bqk"}> : () -> ()
    %cst_31 = arith.constant dense<0.000000e+00> : vector<2x8x8xf32>
    %93 = tpu.matmul %88, %90, %cst_31 {dimension_numbers = #tpu.dot_dimension_numbers<[2], [2], [1], [1], [0, 0, 0, 1, 1, 1], [0], [0]>} : vector<2x8x8xf32>, vector<2x8x8xf32>, vector<2x8x8xf32> -> vector<2x8x8xf32>
    "tpu.trace_stop"() : () -> ()
    %94 = vector.broadcast %38 : vector<2x1x8xf32> to vector<2x8x8xf32>
    %95 = arith.addf %93, %94 : vector<2x8x8xf32>
    %cst_32 = arith.constant dense<0xFF800000> : vector<2x8xf32>
    %96 = vector.multi_reduction <maximumf>, %95, %cst_32 [2] : vector<2x8x8xf32> to vector<2x8xf32>
    %97 = vector.shape_cast %96 : vector<2x8xf32> to vector<2x8x1xf32>
    %98 = vector.broadcast %97 : vector<2x8x1xf32> to vector<2x8x8xf32>
    %99 = arith.subf %95, %98 : vector<2x8x8xf32>
    %100 = math.exp %99 : vector<2x8x8xf32>
    %cst_33 = arith.constant dense<0.000000e+00> : vector<2x8xf32>
    %101 = vector.multi_reduction <add>, %100, %cst_33 [2] : vector<2x8x8xf32> to vector<2x8xf32>
    %102 = vector.shape_cast %101 : vector<2x8xf32> to vector<2x8x1xf32>
    %103 = vector.broadcast %102 : vector<2x8x1xf32> to vector<2x8x8xf32>
    %104 = arith.divf %100, %103 : vector<2x8x8xf32>
    "tpu.trace_start"() <{level = 10 : i32, message = "bqk,bkd->bqd"}> : () -> ()
    %cst_34 = arith.constant dense<0.000000e+00> : vector<2x8x8xf32>
    %105 = tpu.matmul %104, %92, %cst_34 {dimension_numbers = #tpu.dot_dimension_numbers<[2], [1], [1], [2], [0, 0, 0, 1, 1, 2], [0], [0]>} : vector<2x8x8xf32>, vector<2x8x8xf32>, vector<2x8x8xf32> -> vector<2x8x8xf32>
    "tpu.trace_stop"() : () -> ()
    %106 = vector.shape_cast %105 : vector<2x8x8xf32> to vector<16x8xf32>
    %107 = vector.extract_strided_slice %46 {offsets = [0, 24], sizes = [16, 8], strides = [1, 1]} : vector<16x96xf32> to vector<16x8xf32>
    %108 = vector.shape_cast %107 : vector<16x8xf32> to vector<2x8x8xf32>
    %109 = vector.extract_strided_slice %46 {offsets = [0, 56], sizes = [16, 8], strides = [1, 1]} : vector<16x96xf32> to vector<16x8xf32>
    %110 = vector.shape_cast %109 : vector<16x8xf32> to vector<2x8x8xf32>
    %111 = vector.extract_strided_slice %46 {offsets = [0, 88], sizes = [16, 8], strides = [1, 1]} : vector<16x96xf32> to vector<16x8xf32>
    %112 = vector.shape_cast %111 : vector<16x8xf32> to vector<2x8x8xf32>
    "tpu.trace_start"() <{level = 10 : i32, message = "bqd,bkd->bqk"}> : () -> ()
    %cst_35 = arith.constant dense<0.000000e+00> : vector<2x8x8xf32>
    %113 = tpu.matmul %108, %110, %cst_35 {dimension_numbers = #tpu.dot_dimension_numbers<[2], [2], [1], [1], [0, 0, 0, 1, 1, 1], [0], [0]>} : vector<2x8x8xf32>, vector<2x8x8xf32>, vector<2x8x8xf32> -> vector<2x8x8xf32>
    "tpu.trace_stop"() : () -> ()
    %114 = vector.broadcast %38 : vector<2x1x8xf32> to vector<2x8x8xf32>
    %115 = arith.addf %113, %114 : vector<2x8x8xf32>
    %cst_36 = arith.constant dense<0xFF800000> : vector<2x8xf32>
    %116 = vector.multi_reduction <maximumf>, %115, %cst_36 [2] : vector<2x8x8xf32> to vector<2x8xf32>
    %117 = vector.shape_cast %116 : vector<2x8xf32> to vector<2x8x1xf32>
    %118 = vector.broadcast %117 : vector<2x8x1xf32> to vector<2x8x8xf32>
    %119 = arith.subf %115, %118 : vector<2x8x8xf32>
    %120 = math.exp %119 : vector<2x8x8xf32>
    %cst_37 = arith.constant dense<0.000000e+00> : vector<2x8xf32>
    %121 = vector.multi_reduction <add>, %120, %cst_37 [2] : vector<2x8x8xf32> to vector<2x8xf32>
    %122 = vector.shape_cast %121 : vector<2x8xf32> to vector<2x8x1xf32>
    %123 = vector.broadcast %122 : vector<2x8x1xf32> to vector<2x8x8xf32>
    %124 = arith.divf %120, %123 : vector<2x8x8xf32>
    "tpu.trace_start"() <{level = 10 : i32, message = "bqk,bkd->bqd"}> : () -> ()
    %cst_38 = arith.constant dense<0.000000e+00> : vector<2x8x8xf32>
    %125 = tpu.matmul %124, %112, %cst_38 {dimension_numbers = #tpu.dot_dimension_numbers<[2], [1], [1], [2], [0, 0, 0, 1, 1, 2], [0], [0]>} : vector<2x8x8xf32>, vector<2x8x8xf32>, vector<2x8x8xf32> -> vector<2x8x8xf32>
    "tpu.trace_stop"() : () -> ()
    %126 = vector.shape_cast %125 : vector<2x8x8xf32> to vector<16x8xf32>
    %127 = tpu.concatenate %66, %86, %106, %126 in 1 : vector<16x8xf32>, vector<16x8xf32>, vector<16x8xf32>, vector<16x8xf32> -> vector<16x32xf32>
    %c0_39 = arith.constant 0 : index
    %c0_40 = arith.constant 0 : index
    %c0_41 = arith.constant 0 : index
    %128 = vector.load %arg6[%c0_39, %c0_40, %c0_41] : memref<2x32x32xf32, #tpu.memory_space<vmem>>, vector<1x32x32xf32>
    %129 = vector.shape_cast %128 : vector<1x32x32xf32> to vector<32x32xf32>
    %cst_42 = arith.constant dense<0.000000e+00> : vector<16x32xf32>
    %130 = tpu.matmul %127, %129, %cst_42 {dimension_numbers = #tpu.dot_dimension_numbers<[1], [0], [0], [1], [0, 0, 1, 1], [], []>} : vector<16x32xf32>, vector<32x32xf32>, vector<16x32xf32> -> vector<16x32xf32>
    %131 = vector.extract_strided_slice %40 {offsets = [1, 0], sizes = [1, 32], strides = [1, 1]} : vector<8x128xf32> to vector<1x32xf32>
    %132 = vector.broadcast %131 : vector<1x32xf32> to vector<16x32xf32>
    %133 = arith.addf %130, %132 : vector<16x32xf32>
    %134 = arith.addf %31, %133 : vector<16x32xf32>
    %135 = vector.extract_strided_slice %40 {offsets = [2, 0], sizes = [1, 32], strides = [1, 1]} : vector<8x128xf32> to vector<1x32xf32>
    %136 = vector.extract_strided_slice %40 {offsets = [3, 0], sizes = [1, 32], strides = [1, 1]} : vector<8x128xf32> to vector<1x32xf32>
    %cst_43 = arith.constant dense<0.000000e+00> : vector<16xf32>
    %137 = vector.multi_reduction <add>, %134, %cst_43 [1] : vector<16x32xf32> to vector<16xf32>
    %138 = vector.shape_cast %137 : vector<16xf32> to vector<16x1xf32>
    %cst_44 = arith.constant 3.200000e+01 : f32
    %139 = vector.broadcast %cst_44 : f32 to vector<16x1xf32>
    %140 = arith.divf %138, %139 : vector<16x1xf32>
    %141 = vector.broadcast %140 : vector<16x1xf32> to vector<16x32xf32>
    %142 = arith.subf %134, %141 : vector<16x32xf32>
    %143 = arith.mulf %142, %142 : vector<16x32xf32>
    %cst_45 = arith.constant dense<0.000000e+00> : vector<16xf32>
    %144 = vector.multi_reduction <add>, %143, %cst_45 [1] : vector<16x32xf32> to vector<16xf32>
    %145 = vector.shape_cast %144 : vector<16xf32> to vector<16x1xf32>
    %cst_46 = arith.constant 3.200000e+01 : f32
    %146 = vector.broadcast %cst_46 : f32 to vector<16x1xf32>
    %147 = arith.divf %145, %146 : vector<16x1xf32>
    %cst_47 = arith.constant 9.99999996E-13 : f32
    %148 = vector.broadcast %cst_47 : f32 to vector<16x1xf32>
    %149 = arith.addf %147, %148 : vector<16x1xf32>
    %150 = math.rsqrt %149 : vector<16x1xf32>
    %151 = vector.broadcast %150 : vector<16x1xf32> to vector<16x32xf32>
    %152 = arith.mulf %142, %151 : vector<16x32xf32>
    %153 = vector.broadcast %135 : vector<1x32xf32> to vector<16x32xf32>
    %154 = arith.mulf %152, %153 : vector<16x32xf32>
    %155 = vector.broadcast %136 : vector<1x32xf32> to vector<16x32xf32>
    %156 = arith.addf %154, %155 : vector<16x32xf32>
    %c0_48 = arith.constant 0 : index
    %c0_49 = arith.constant 0 : index
    %c0_50 = arith.constant 0 : index
    %157 = vector.load %arg7[%c0_48, %c0_49, %c0_50] : memref<2x32x64xf32, #tpu.memory_space<vmem>>, vector<1x32x64xf32>
    %158 = vector.shape_cast %157 : vector<1x32x64xf32> to vector<32x64xf32>
    %cst_51 = arith.constant dense<0.000000e+00> : vector<16x64xf32>
    %159 = tpu.matmul %156, %158, %cst_51 {dimension_numbers = #tpu.dot_dimension_numbers<[1], [0], [0], [1], [0, 0, 1, 1], [], []>} : vector<16x32xf32>, vector<32x64xf32>, vector<16x64xf32> -> vector<16x64xf32>
    %160 = vector.extract_strided_slice %40 {offsets = [4, 0], sizes = [1, 64], strides = [1, 1]} : vector<8x128xf32> to vector<1x64xf32>
    %161 = vector.broadcast %160 : vector<1x64xf32> to vector<16x64xf32>
    %162 = arith.addf %159, %161 : vector<16x64xf32>
    %cst_52 = arith.constant 5.000000e-01 : f32
    %163 = vector.broadcast %cst_52 : f32 to vector<16x64xf32>
    %164 = arith.mulf %163, %162 : vector<16x64xf32>
    %cst_53 = arith.constant 4.471500e-02 : f32
    %165 = vector.broadcast %cst_53 : f32 to vector<16x64xf32>
    %166 = arith.mulf %165, %162 : vector<16x64xf32>
    %167 = arith.mulf %166, %162 : vector<16x64xf32>
    %168 = arith.mulf %167, %162 : vector<16x64xf32>
    %169 = arith.addf %162, %168 : vector<16x64xf32>
    %cst_54 = arith.constant 0.797884583 : f32
    %170 = vector.broadcast %cst_54 : f32 to vector<16x64xf32>
    %171 = arith.mulf %170, %169 : vector<16x64xf32>
    %172 = math.tanh %171 : vector<16x64xf32>
    %cst_55 = arith.constant 1.000000e+00 : f32
    %173 = vector.broadcast %cst_55 : f32 to vector<16x64xf32>
    %174 = arith.addf %173, %172 : vector<16x64xf32>
    %175 = arith.mulf %164, %174 : vector<16x64xf32>
    %c0_56 = arith.constant 0 : index
    %c0_57 = arith.constant 0 : index
    %c0_58 = arith.constant 0 : index
    %176 = vector.load %arg8[%c0_56, %c0_57, %c0_58] : memref<2x64x32xf32, #tpu.memory_space<vmem>>, vector<1x64x32xf32>
    %177 = vector.shape_cast %176 : vector<1x64x32xf32> to vector<64x32xf32>
    %cst_59 = arith.constant dense<0.000000e+00> : vector<16x32xf32>
    %178 = tpu.matmul %175, %177, %cst_59 {dimension_numbers = #tpu.dot_dimension_numbers<[1], [0], [0], [1], [0, 0, 1, 1], [], []>} : vector<16x64xf32>, vector<64x32xf32>, vector<16x32xf32> -> vector<16x32xf32>
    %179 = vector.extract_strided_slice %40 {offsets = [5, 0], sizes = [1, 32], strides = [1, 1]} : vector<8x128xf32> to vector<1x32xf32>
    %180 = vector.broadcast %179 : vector<1x32xf32> to vector<16x32xf32>
    %181 = arith.addf %178, %180 : vector<16x32xf32>
    %182 = arith.addf %156, %181 : vector<16x32xf32>
    %183 = vector.extract_strided_slice %40 {offsets = [6, 0], sizes = [1, 32], strides = [1, 1]} : vector<8x128xf32> to vector<1x32xf32>
    %184 = vector.extract_strided_slice %40 {offsets = [7, 0], sizes = [1, 32], strides = [1, 1]} : vector<8x128xf32> to vector<1x32xf32>
    %cst_60 = arith.constant dense<0.000000e+00> : vector<16xf32>
    %185 = vector.multi_reduction <add>, %182, %cst_60 [1] : vector<16x32xf32> to vector<16xf32>
    %186 = vector.shape_cast %185 : vector<16xf32> to vector<16x1xf32>
    %cst_61 = arith.constant 3.200000e+01 : f32
    %187 = vector.broadcast %cst_61 : f32 to vector<16x1xf32>
    %188 = arith.divf %186, %187 : vector<16x1xf32>
    %189 = vector.broadcast %188 : vector<16x1xf32> to vector<16x32xf32>
    %190 = arith.subf %182, %189 : vector<16x32xf32>
    %191 = arith.mulf %190, %190 : vector<16x32xf32>
    %cst_62 = arith.constant dense<0.000000e+00> : vector<16xf32>
    %192 = vector.multi_reduction <add>, %191, %cst_62 [1] : vector<16x32xf32> to vector<16xf32>
    %193 = vector.shape_cast %192 : vector<16xf32> to vector<16x1xf32>
    %cst_63 = arith.constant 3.200000e+01 : f32
    %194 = vector.broadcast %cst_63 : f32 to vector<16x1xf32>
    %195 = arith.divf %193, %194 : vector<16x1xf32>
    %cst_64 = arith.constant 9.99999996E-13 : f32
    %196 = vector.broadcast %cst_64 : f32 to vector<16x1xf32>
    %197 = arith.addf %195, %196 : vector<16x1xf32>
    %198 = math.rsqrt %197 : vector<16x1xf32>
    %199 = vector.broadcast %198 : vector<16x1xf32> to vector<16x32xf32>
    %200 = arith.mulf %190, %199 : vector<16x32xf32>
    %201 = vector.broadcast %183 : vector<1x32xf32> to vector<16x32xf32>
    %202 = arith.mulf %200, %201 : vector<16x32xf32>
    %203 = vector.broadcast %184 : vector<1x32xf32> to vector<16x32xf32>
    %204 = arith.addf %202, %203 : vector<16x32xf32>
    %c1 = arith.constant 1 : index
    %c0_65 = arith.constant 0 : index
    %c0_66 = arith.constant 0 : index
    %205 = vector.load %arg9[%c1, %c0_65, %c0_66] : memref<2x8x128xf32, #tpu.memory_space<vmem>>, vector<1x8x128xf32>
    %206 = vector.shape_cast %205 : vector<1x8x128xf32> to vector<8x128xf32>
    %c1_67 = arith.constant 1 : index
    %c0_68 = arith.constant 0 : index
    %c0_69 = arith.constant 0 : index
    %207 = vector.load %arg5[%c1_67, %c0_68, %c0_69] : memref<2x32x96xf32, #tpu.memory_space<vmem>>, vector<1x32x96xf32>
    %208 = vector.shape_cast %207 : vector<1x32x96xf32> to vector<32x96xf32>
    %cst_70 = arith.constant dense<0.000000e+00> : vector<16x96xf32>
    %209 = tpu.matmul %204, %208, %cst_70 {dimension_numbers = #tpu.dot_dimension_numbers<[1], [0], [0], [1], [0, 0, 1, 1], [], []>} : vector<16x32xf32>, vector<32x96xf32>, vector<16x96xf32> -> vector<16x96xf32>
    %210 = vector.extract_strided_slice %206 {offsets = [0, 0], sizes = [1, 96], strides = [1, 1]} : vector<8x128xf32> to vector<1x96xf32>
    %211 = vector.broadcast %210 : vector<1x96xf32> to vector<16x96xf32>
    %212 = arith.addf %209, %211 : vector<16x96xf32>
    %213 = vector.extract_strided_slice %212 {offsets = [0, 0], sizes = [16, 8], strides = [1, 1]} : vector<16x96xf32> to vector<16x8xf32>
    %214 = vector.shape_cast %213 : vector<16x8xf32> to vector<2x8x8xf32>
    %215 = vector.extract_strided_slice %212 {offsets = [0, 32], sizes = [16, 8], strides = [1, 1]} : vector<16x96xf32> to vector<16x8xf32>
    %216 = vector.shape_cast %215 : vector<16x8xf32> to vector<2x8x8xf32>
    %217 = vector.extract_strided_slice %212 {offsets = [0, 64], sizes = [16, 8], strides = [1, 1]} : vector<16x96xf32> to vector<16x8xf32>
    %218 = vector.shape_cast %217 : vector<16x8xf32> to vector<2x8x8xf32>
    "tpu.trace_start"() <{level = 10 : i32, message = "bqd,bkd->bqk"}> : () -> ()
    %cst_71 = arith.constant dense<0.000000e+00> : vector<2x8x8xf32>
    %219 = tpu.matmul %214, %216, %cst_71 {dimension_numbers = #tpu.dot_dimension_numbers<[2], [2], [1], [1], [0, 0, 0, 1, 1, 1], [0], [0]>} : vector<2x8x8xf32>, vector<2x8x8xf32>, vector<2x8x8xf32> -> vector<2x8x8xf32>
    "tpu.trace_stop"() : () -> ()
    %220 = vector.broadcast %38 : vector<2x1x8xf32> to vector<2x8x8xf32>
    %221 = arith.addf %219, %220 : vector<2x8x8xf32>
    %cst_72 = arith.constant dense<0xFF800000> : vector<2x8xf32>
    %222 = vector.multi_reduction <maximumf>, %221, %cst_72 [2] : vector<2x8x8xf32> to vector<2x8xf32>
    %223 = vector.shape_cast %222 : vector<2x8xf32> to vector<2x8x1xf32>
    %224 = vector.broadcast %223 : vector<2x8x1xf32> to vector<2x8x8xf32>
    %225 = arith.subf %221, %224 : vector<2x8x8xf32>
    %226 = math.exp %225 : vector<2x8x8xf32>
    %cst_73 = arith.constant dense<0.000000e+00> : vector<2x8xf32>
    %227 = vector.multi_reduction <add>, %226, %cst_73 [2] : vector<2x8x8xf32> to vector<2x8xf32>
    %228 = vector.shape_cast %227 : vector<2x8xf32> to vector<2x8x1xf32>
    %229 = vector.broadcast %228 : vector<2x8x1xf32> to vector<2x8x8xf32>
    %230 = arith.divf %226, %229 : vector<2x8x8xf32>
    "tpu.trace_start"() <{level = 10 : i32, message = "bqk,bkd->bqd"}> : () -> ()
    %cst_74 = arith.constant dense<0.000000e+00> : vector<2x8x8xf32>
    %231 = tpu.matmul %230, %218, %cst_74 {dimension_numbers = #tpu.dot_dimension_numbers<[2], [1], [1], [2], [0, 0, 0, 1, 1, 2], [0], [0]>} : vector<2x8x8xf32>, vector<2x8x8xf32>, vector<2x8x8xf32> -> vector<2x8x8xf32>
    "tpu.trace_stop"() : () -> ()
    %232 = vector.shape_cast %231 : vector<2x8x8xf32> to vector<16x8xf32>
    %233 = vector.extract_strided_slice %212 {offsets = [0, 8], sizes = [16, 8], strides = [1, 1]} : vector<16x96xf32> to vector<16x8xf32>
    %234 = vector.shape_cast %233 : vector<16x8xf32> to vector<2x8x8xf32>
    %235 = vector.extract_strided_slice %212 {offsets = [0, 40], sizes = [16, 8], strides = [1, 1]} : vector<16x96xf32> to vector<16x8xf32>
    %236 = vector.shape_cast %235 : vector<16x8xf32> to vector<2x8x8xf32>
    %237 = vector.extract_strided_slice %212 {offsets = [0, 72], sizes = [16, 8], strides = [1, 1]} : vector<16x96xf32> to vector<16x8xf32>
    %238 = vector.shape_cast %237 : vector<16x8xf32> to vector<2x8x8xf32>
    "tpu.trace_start"() <{level = 10 : i32, message = "bqd,bkd->bqk"}> : () -> ()
    %cst_75 = arith.constant dense<0.000000e+00> : vector<2x8x8xf32>
    %239 = tpu.matmul %234, %236, %cst_75 {dimension_numbers = #tpu.dot_dimension_numbers<[2], [2], [1], [1], [0, 0, 0, 1, 1, 1], [0], [0]>} : vector<2x8x8xf32>, vector<2x8x8xf32>, vector<2x8x8xf32> -> vector<2x8x8xf32>
    "tpu.trace_stop"() : () -> ()
    %240 = vector.broadcast %38 : vector<2x1x8xf32> to vector<2x8x8xf32>
    %241 = arith.addf %239, %240 : vector<2x8x8xf32>
    %cst_76 = arith.constant dense<0xFF800000> : vector<2x8xf32>
    %242 = vector.multi_reduction <maximumf>, %241, %cst_76 [2] : vector<2x8x8xf32> to vector<2x8xf32>
    %243 = vector.shape_cast %242 : vector<2x8xf32> to vector<2x8x1xf32>
    %244 = vector.broadcast %243 : vector<2x8x1xf32> to vector<2x8x8xf32>
    %245 = arith.subf %241, %244 : vector<2x8x8xf32>
    %246 = math.exp %245 : vector<2x8x8xf32>
    %cst_77 = arith.constant dense<0.000000e+00> : vector<2x8xf32>
    %247 = vector.multi_reduction <add>, %246, %cst_77 [2] : vector<2x8x8xf32> to vector<2x8xf32>
    %248 = vector.shape_cast %247 : vector<2x8xf32> to vector<2x8x1xf32>
    %249 = vector.broadcast %248 : vector<2x8x1xf32> to vector<2x8x8xf32>
    %250 = arith.divf %246, %249 : vector<2x8x8xf32>
    "tpu.trace_start"() <{level = 10 : i32, message = "bqk,bkd->bqd"}> : () -> ()
    %cst_78 = arith.constant dense<0.000000e+00> : vector<2x8x8xf32>
    %251 = tpu.matmul %250, %238, %cst_78 {dimension_numbers = #tpu.dot_dimension_numbers<[2], [1], [1], [2], [0, 0, 0, 1, 1, 2], [0], [0]>} : vector<2x8x8xf32>, vector<2x8x8xf32>, vector<2x8x8xf32> -> vector<2x8x8xf32>
    "tpu.trace_stop"() : () -> ()
    %252 = vector.shape_cast %251 : vector<2x8x8xf32> to vector<16x8xf32>
    %253 = vector.extract_strided_slice %212 {offsets = [0, 16], sizes = [16, 8], strides = [1, 1]} : vector<16x96xf32> to vector<16x8xf32>
    %254 = vector.shape_cast %253 : vector<16x8xf32> to vector<2x8x8xf32>
    %255 = vector.extract_strided_slice %212 {offsets = [0, 48], sizes = [16, 8], strides = [1, 1]} : vector<16x96xf32> to vector<16x8xf32>
    %256 = vector.shape_cast %255 : vector<16x8xf32> to vector<2x8x8xf32>
    %257 = vector.extract_strided_slice %212 {offsets = [0, 80], sizes = [16, 8], strides = [1, 1]} : vector<16x96xf32> to vector<16x8xf32>
    %258 = vector.shape_cast %257 : vector<16x8xf32> to vector<2x8x8xf32>
    "tpu.trace_start"() <{level = 10 : i32, message = "bqd,bkd->bqk"}> : () -> ()
    %cst_79 = arith.constant dense<0.000000e+00> : vector<2x8x8xf32>
    %259 = tpu.matmul %254, %256, %cst_79 {dimension_numbers = #tpu.dot_dimension_numbers<[2], [2], [1], [1], [0, 0, 0, 1, 1, 1], [0], [0]>} : vector<2x8x8xf32>, vector<2x8x8xf32>, vector<2x8x8xf32> -> vector<2x8x8xf32>
    "tpu.trace_stop"() : () -> ()
    %260 = vector.broadcast %38 : vector<2x1x8xf32> to vector<2x8x8xf32>
    %261 = arith.addf %259, %260 : vector<2x8x8xf32>
    %cst_80 = arith.constant dense<0xFF800000> : vector<2x8xf32>
    %262 = vector.multi_reduction <maximumf>, %261, %cst_80 [2] : vector<2x8x8xf32> to vector<2x8xf32>
    %263 = vector.shape_cast %262 : vector<2x8xf32> to vector<2x8x1xf32>
    %264 = vector.broadcast %263 : vector<2x8x1xf32> to vector<2x8x8xf32>
    %265 = arith.subf %261, %264 : vector<2x8x8xf32>
    %266 = math.exp %265 : vector<2x8x8xf32>
    %cst_81 = arith.constant dense<0.000000e+00> : vector<2x8xf32>
    %267 = vector.multi_reduction <add>, %266, %cst_81 [2] : vector<2x8x8xf32> to vector<2x8xf32>
    %268 = vector.shape_cast %267 : vector<2x8xf32> to vector<2x8x1xf32>
    %269 = vector.broadcast %268 : vector<2x8x1xf32> to vector<2x8x8xf32>
    %270 = arith.divf %266, %269 : vector<2x8x8xf32>
    "tpu.trace_start"() <{level = 10 : i32, message = "bqk,bkd->bqd"}> : () -> ()
    %cst_82 = arith.constant dense<0.000000e+00> : vector<2x8x8xf32>
    %271 = tpu.matmul %270, %258, %cst_82 {dimension_numbers = #tpu.dot_dimension_numbers<[2], [1], [1], [2], [0, 0, 0, 1, 1, 2], [0], [0]>} : vector<2x8x8xf32>, vector<2x8x8xf32>, vector<2x8x8xf32> -> vector<2x8x8xf32>
    "tpu.trace_stop"() : () -> ()
    %272 = vector.shape_cast %271 : vector<2x8x8xf32> to vector<16x8xf32>
    %273 = vector.extract_strided_slice %212 {offsets = [0, 24], sizes = [16, 8], strides = [1, 1]} : vector<16x96xf32> to vector<16x8xf32>
    %274 = vector.shape_cast %273 : vector<16x8xf32> to vector<2x8x8xf32>
    %275 = vector.extract_strided_slice %212 {offsets = [0, 56], sizes = [16, 8], strides = [1, 1]} : vector<16x96xf32> to vector<16x8xf32>
    %276 = vector.shape_cast %275 : vector<16x8xf32> to vector<2x8x8xf32>
    %277 = vector.extract_strided_slice %212 {offsets = [0, 88], sizes = [16, 8], strides = [1, 1]} : vector<16x96xf32> to vector<16x8xf32>
    %278 = vector.shape_cast %277 : vector<16x8xf32> to vector<2x8x8xf32>
    "tpu.trace_start"() <{level = 10 : i32, message = "bqd,bkd->bqk"}> : () -> ()
    %cst_83 = arith.constant dense<0.000000e+00> : vector<2x8x8xf32>
    %279 = tpu.matmul %274, %276, %cst_83 {dimension_numbers = #tpu.dot_dimension_numbers<[2], [2], [1], [1], [0, 0, 0, 1, 1, 1], [0], [0]>} : vector<2x8x8xf32>, vector<2x8x8xf32>, vector<2x8x8xf32> -> vector<2x8x8xf32>
    "tpu.trace_stop"() : () -> ()
    %280 = vector.broadcast %38 : vector<2x1x8xf32> to vector<2x8x8xf32>
    %281 = arith.addf %279, %280 : vector<2x8x8xf32>
    %cst_84 = arith.constant dense<0xFF800000> : vector<2x8xf32>
    %282 = vector.multi_reduction <maximumf>, %281, %cst_84 [2] : vector<2x8x8xf32> to vector<2x8xf32>
    %283 = vector.shape_cast %282 : vector<2x8xf32> to vector<2x8x1xf32>
    %284 = vector.broadcast %283 : vector<2x8x1xf32> to vector<2x8x8xf32>
    %285 = arith.subf %281, %284 : vector<2x8x8xf32>
    %286 = math.exp %285 : vector<2x8x8xf32>
    %cst_85 = arith.constant dense<0.000000e+00> : vector<2x8xf32>
    %287 = vector.multi_reduction <add>, %286, %cst_85 [2] : vector<2x8x8xf32> to vector<2x8xf32>
    %288 = vector.shape_cast %287 : vector<2x8xf32> to vector<2x8x1xf32>
    %289 = vector.broadcast %288 : vector<2x8x1xf32> to vector<2x8x8xf32>
    %290 = arith.divf %286, %289 : vector<2x8x8xf32>
    "tpu.trace_start"() <{level = 10 : i32, message = "bqk,bkd->bqd"}> : () -> ()
    %cst_86 = arith.constant dense<0.000000e+00> : vector<2x8x8xf32>
    %291 = tpu.matmul %290, %278, %cst_86 {dimension_numbers = #tpu.dot_dimension_numbers<[2], [1], [1], [2], [0, 0, 0, 1, 1, 2], [0], [0]>} : vector<2x8x8xf32>, vector<2x8x8xf32>, vector<2x8x8xf32> -> vector<2x8x8xf32>
    "tpu.trace_stop"() : () -> ()
    %292 = vector.shape_cast %291 : vector<2x8x8xf32> to vector<16x8xf32>
    %293 = tpu.concatenate %232, %252, %272, %292 in 1 : vector<16x8xf32>, vector<16x8xf32>, vector<16x8xf32>, vector<16x8xf32> -> vector<16x32xf32>
    %c1_87 = arith.constant 1 : index
    %c0_88 = arith.constant 0 : index
    %c0_89 = arith.constant 0 : index
    %294 = vector.load %arg6[%c1_87, %c0_88, %c0_89] : memref<2x32x32xf32, #tpu.memory_space<vmem>>, vector<1x32x32xf32>
    %295 = vector.shape_cast %294 : vector<1x32x32xf32> to vector<32x32xf32>
    %cst_90 = arith.constant dense<0.000000e+00> : vector<16x32xf32>
    %296 = tpu.matmul %293, %295, %cst_90 {dimension_numbers = #tpu.dot_dimension_numbers<[1], [0], [0], [1], [0, 0, 1, 1], [], []>} : vector<16x32xf32>, vector<32x32xf32>, vector<16x32xf32> -> vector<16x32xf32>
    %297 = vector.extract_strided_slice %206 {offsets = [1, 0], sizes = [1, 32], strides = [1, 1]} : vector<8x128xf32> to vector<1x32xf32>
    %298 = vector.broadcast %297 : vector<1x32xf32> to vector<16x32xf32>
    %299 = arith.addf %296, %298 : vector<16x32xf32>
    %300 = arith.addf %204, %299 : vector<16x32xf32>
    %301 = vector.extract_strided_slice %206 {offsets = [2, 0], sizes = [1, 32], strides = [1, 1]} : vector<8x128xf32> to vector<1x32xf32>
    %302 = vector.extract_strided_slice %206 {offsets = [3, 0], sizes = [1, 32], strides = [1, 1]} : vector<8x128xf32> to vector<1x32xf32>
    %cst_91 = arith.constant dense<0.000000e+00> : vector<16xf32>
    %303 = vector.multi_reduction <add>, %300, %cst_91 [1] : vector<16x32xf32> to vector<16xf32>
    %304 = vector.shape_cast %303 : vector<16xf32> to vector<16x1xf32>
    %cst_92 = arith.constant 3.200000e+01 : f32
    %305 = vector.broadcast %cst_92 : f32 to vector<16x1xf32>
    %306 = arith.divf %304, %305 : vector<16x1xf32>
    %307 = vector.broadcast %306 : vector<16x1xf32> to vector<16x32xf32>
    %308 = arith.subf %300, %307 : vector<16x32xf32>
    %309 = arith.mulf %308, %308 : vector<16x32xf32>
    %cst_93 = arith.constant dense<0.000000e+00> : vector<16xf32>
    %310 = vector.multi_reduction <add>, %309, %cst_93 [1] : vector<16x32xf32> to vector<16xf32>
    %311 = vector.shape_cast %310 : vector<16xf32> to vector<16x1xf32>
    %cst_94 = arith.constant 3.200000e+01 : f32
    %312 = vector.broadcast %cst_94 : f32 to vector<16x1xf32>
    %313 = arith.divf %311, %312 : vector<16x1xf32>
    %cst_95 = arith.constant 9.99999996E-13 : f32
    %314 = vector.broadcast %cst_95 : f32 to vector<16x1xf32>
    %315 = arith.addf %313, %314 : vector<16x1xf32>
    %316 = math.rsqrt %315 : vector<16x1xf32>
    %317 = vector.broadcast %316 : vector<16x1xf32> to vector<16x32xf32>
    %318 = arith.mulf %308, %317 : vector<16x32xf32>
    %319 = vector.broadcast %301 : vector<1x32xf32> to vector<16x32xf32>
    %320 = arith.mulf %318, %319 : vector<16x32xf32>
    %321 = vector.broadcast %302 : vector<1x32xf32> to vector<16x32xf32>
    %322 = arith.addf %320, %321 : vector<16x32xf32>
    %c1_96 = arith.constant 1 : index
    %c0_97 = arith.constant 0 : index
    %c0_98 = arith.constant 0 : index
    %323 = vector.load %arg7[%c1_96, %c0_97, %c0_98] : memref<2x32x64xf32, #tpu.memory_space<vmem>>, vector<1x32x64xf32>
    %324 = vector.shape_cast %323 : vector<1x32x64xf32> to vector<32x64xf32>
    %cst_99 = arith.constant dense<0.000000e+00> : vector<16x64xf32>
    %325 = tpu.matmul %322, %324, %cst_99 {dimension_numbers = #tpu.dot_dimension_numbers<[1], [0], [0], [1], [0, 0, 1, 1], [], []>} : vector<16x32xf32>, vector<32x64xf32>, vector<16x64xf32> -> vector<16x64xf32>
    %326 = vector.extract_strided_slice %206 {offsets = [4, 0], sizes = [1, 64], strides = [1, 1]} : vector<8x128xf32> to vector<1x64xf32>
    %327 = vector.broadcast %326 : vector<1x64xf32> to vector<16x64xf32>
    %328 = arith.addf %325, %327 : vector<16x64xf32>
    %cst_100 = arith.constant 5.000000e-01 : f32
    %329 = vector.broadcast %cst_100 : f32 to vector<16x64xf32>
    %330 = arith.mulf %329, %328 : vector<16x64xf32>
    %cst_101 = arith.constant 4.471500e-02 : f32
    %331 = vector.broadcast %cst_101 : f32 to vector<16x64xf32>
    %332 = arith.mulf %331, %328 : vector<16x64xf32>
    %333 = arith.mulf %332, %328 : vector<16x64xf32>
    %334 = arith.mulf %333, %328 : vector<16x64xf32>
    %335 = arith.addf %328, %334 : vector<16x64xf32>
    %cst_102 = arith.constant 0.797884583 : f32
    %336 = vector.broadcast %cst_102 : f32 to vector<16x64xf32>
    %337 = arith.mulf %336, %335 : vector<16x64xf32>
    %338 = math.tanh %337 : vector<16x64xf32>
    %cst_103 = arith.constant 1.000000e+00 : f32
    %339 = vector.broadcast %cst_103 : f32 to vector<16x64xf32>
    %340 = arith.addf %339, %338 : vector<16x64xf32>
    %341 = arith.mulf %330, %340 : vector<16x64xf32>
    %c1_104 = arith.constant 1 : index
    %c0_105 = arith.constant 0 : index
    %c0_106 = arith.constant 0 : index
    %342 = vector.load %arg8[%c1_104, %c0_105, %c0_106] : memref<2x64x32xf32, #tpu.memory_space<vmem>>, vector<1x64x32xf32>
    %343 = vector.shape_cast %342 : vector<1x64x32xf32> to vector<64x32xf32>
    %cst_107 = arith.constant dense<0.000000e+00> : vector<16x32xf32>
    %344 = tpu.matmul %341, %343, %cst_107 {dimension_numbers = #tpu.dot_dimension_numbers<[1], [0], [0], [1], [0, 0, 1, 1], [], []>} : vector<16x64xf32>, vector<64x32xf32>, vector<16x32xf32> -> vector<16x32xf32>
    %345 = vector.extract_strided_slice %206 {offsets = [5, 0], sizes = [1, 32], strides = [1, 1]} : vector<8x128xf32> to vector<1x32xf32>
    %346 = vector.broadcast %345 : vector<1x32xf32> to vector<16x32xf32>
    %347 = arith.addf %344, %346 : vector<16x32xf32>
    %348 = arith.addf %322, %347 : vector<16x32xf32>
    %349 = vector.extract_strided_slice %206 {offsets = [6, 0], sizes = [1, 32], strides = [1, 1]} : vector<8x128xf32> to vector<1x32xf32>
    %350 = vector.extract_strided_slice %206 {offsets = [7, 0], sizes = [1, 32], strides = [1, 1]} : vector<8x128xf32> to vector<1x32xf32>
    %cst_108 = arith.constant dense<0.000000e+00> : vector<16xf32>
    %351 = vector.multi_reduction <add>, %348, %cst_108 [1] : vector<16x32xf32> to vector<16xf32>
    %352 = vector.shape_cast %351 : vector<16xf32> to vector<16x1xf32>
    %cst_109 = arith.constant 3.200000e+01 : f32
    %353 = vector.broadcast %cst_109 : f32 to vector<16x1xf32>
    %354 = arith.divf %352, %353 : vector<16x1xf32>
    %355 = vector.broadcast %354 : vector<16x1xf32> to vector<16x32xf32>
    %356 = arith.subf %348, %355 : vector<16x32xf32>
    %357 = arith.mulf %356, %356 : vector<16x32xf32>
    %cst_110 = arith.constant dense<0.000000e+00> : vector<16xf32>
    %358 = vector.multi_reduction <add>, %357, %cst_110 [1] : vector<16x32xf32> to vector<16xf32>
    %359 = vector.shape_cast %358 : vector<16xf32> to vector<16x1xf32>
    %cst_111 = arith.constant 3.200000e+01 : f32
    %360 = vector.broadcast %cst_111 : f32 to vector<16x1xf32>
    %361 = arith.divf %359, %360 : vector<16x1xf32>
    %cst_112 = arith.constant 9.99999996E-13 : f32
    %362 = vector.broadcast %cst_112 : f32 to vector<16x1xf32>
    %363 = arith.addf %361, %362 : vector<16x1xf32>
    %364 = math.rsqrt %363 : vector<16x1xf32>
    %365 = vector.broadcast %364 : vector<16x1xf32> to vector<16x32xf32>
    %366 = arith.mulf %356, %365 : vector<16x32xf32>
    %367 = vector.broadcast %349 : vector<1x32xf32> to vector<16x32xf32>
    %368 = arith.mulf %366, %367 : vector<16x32xf32>
    %369 = vector.broadcast %350 : vector<1x32xf32> to vector<16x32xf32>
    %370 = arith.addf %368, %369 : vector<16x32xf32>
    %371 = vector.shape_cast %370 : vector<16x32xf32> to vector<2x8x32xf32>
    %372 = vector.extract_strided_slice %371 {offsets = [0, 0, 0], sizes = [2, 1, 32], strides = [1, 1, 1]} : vector<2x8x32xf32> to vector<2x1x32xf32>
    %373 = vector.shape_cast %372 : vector<2x1x32xf32> to vector<2x32xf32>
    %c0_113 = arith.constant 0 : index
    %c0_114 = arith.constant 0 : index
    %374 = vector.load %arg10[%c0_113, %c0_114] : memref<32x32xf32, #tpu.memory_space<vmem>>, vector<32x32xf32>
    %cst_115 = arith.constant dense<0.000000e+00> : vector<2x32xf32>
    %375 = tpu.matmul %373, %374, %cst_115 {dimension_numbers = #tpu.dot_dimension_numbers<[1], [0], [0], [1], [0, 0, 1, 1], [], []>} : vector<2x32xf32>, vector<32x32xf32>, vector<2x32xf32> -> vector<2x32xf32>
    %c18 = arith.constant 18 : index
    %c0_116 = arith.constant 0 : index
    %376 = vector.load %arg4[%c18, %c0_116] : memref<21x32xf32, #tpu.memory_space<vmem>>, vector<1x32xf32>
    %377 = vector.broadcast %376 : vector<1x32xf32> to vector<2x32xf32>
    %378 = arith.addf %375, %377 : vector<2x32xf32>
    %379 = math.tanh %378 : vector<2x32xf32>
    %c0_117 = arith.constant 0 : index
    %c0_118 = arith.constant 0 : index
    %380 = vector.load %arg11[%c0_117, %c0_118] : memref<32x3xf32, #tpu.memory_space<vmem>>, vector<32x3xf32>
    %cst_119 = arith.constant dense<0.000000e+00> : vector<2x3xf32>
    %381 = tpu.matmul %379, %380, %cst_119 {dimension_numbers = #tpu.dot_dimension_numbers<[1], [0], [0], [1], [0, 0, 1, 1], [], []>} : vector<2x32xf32>, vector<32x3xf32>, vector<2x3xf32> -> vector<2x3xf32>
    %c0_120 = arith.constant 0 : index
    %c0_121 = arith.constant 0 : index
    %382 = vector.load %arg2[%c0_120, %c0_121] : memref<2x1xf32, #tpu.memory_space<vmem>>, vector<2x1xf32>
    %c19 = arith.constant 19 : index
    %c0_122 = arith.constant 0 : index
    %383 = vector.load %arg4[%c19, %c0_122] : memref<21x32xf32, #tpu.memory_space<vmem>>, vector<1x3xf32>
    %384 = vector.broadcast %382 : vector<2x1xf32> to vector<2x3xf32>
    %385 = vector.broadcast %383 : vector<1x3xf32> to vector<2x3xf32>
    %386 = arith.mulf %384, %385 : vector<2x3xf32>
    %387 = arith.addf %381, %386 : vector<2x3xf32>
    %c20 = arith.constant 20 : index
    %c0_123 = arith.constant 0 : index
    %388 = vector.load %arg4[%c20, %c0_123] : memref<21x32xf32, #tpu.memory_space<vmem>>, vector<1x3xf32>
    %389 = vector.broadcast %388 : vector<1x3xf32> to vector<2x3xf32>
    %390 = arith.addf %387, %389 : vector<2x3xf32>
    %c0_124 = arith.constant 0 : index
    %c0_125 = arith.constant 0 : index
    %391 = vector.load %arg12[%c0_124, %c0_125] : memref<2x3xf32, #tpu.memory_space<vmem>>, vector<2x3xf32>
    tpu.vector_store %arg12[%c0_124, %c0_125], %390 {strides = array<i32>} : memref<2x3xf32, #tpu.memory_space<vmem>>, vector<2x3xf32>,
    return
  }
}

</mosaic_0001>

<bundles_post_ra>
// kernel: multitask_forward.1
= control target key start
LH: loop header
LB: loop body
LE: loop exit
PB: predicated region body
PF: predicated region fallthrough
CT: control target
= control target key end

     0   :  { %vm79_vm0 = vcmask 1043456   ;;  %v4718_v0 = vmov 0   ;;  %v4719_v16 = vmov 0.0   ;;  %v43_v17 = vlaneseq  ;;  %s4721_s30 = smov 96   ;;  %s4724_s14 = smov 88   ;;  %s5513_s0 = inlined_call_operand.vmem [shape: s32[16,1], index: 0, kind: input, shape index: {}]   ;;  %s5514_s3 = inlined_call_operand.vmem [shape: f32[100,32], index: 3, kind: input, shape index: {}]   ;;  %s5515_s4 = inlined_call_operand.vmem [shape: f32[21,32], index: 4, kind: input, shape index: {}]   ;;  %s5516_s5 = inlined_call_operand.vmem [shape: f32[2,32,96], index: 5, kind: input, shape index: {}]   ;;  %s5517_s9 = inlined_call_operand.vmem [shape: f32[2,8,128], index: 9, kind: input, shape index: {}]   ;;  %s5518_s1 = inlined_call_operand.vmem [shape: s32[2,8], index: 1, kind: input, shape index: {}]   ;;  %s5519_s6 = inlined_call_operand.vmem [shape: f32[2,32,32], index: 6, kind: input, shape index: {}]   ;;  %s5520_s7 = inlined_call_operand.vmem [shape: f32[2,32,64], index: 7, kind: input, shape index: {}]   ;;  %s5521_s8 = inlined_call_operand.vmem [shape: f32[2,64,32], index: 8, kind: input, shape index: {}]   ;;  %s5522_s2 = inlined_call_operand.vmem [shape: f32[2,1], index: 2, kind: input, shape index: {}]   ;;  %s5523_s10 = inlined_call_operand.vmem [shape: f32[32,32], index: 10, kind: input, shape index: {}]   ;;  %s5524_s11 = inlined_call_operand.vmem [shape: f32[32,3], index: 11, kind: input, shape index: {}]   ;;  %s5525_s12 = inlined_call_operand.vmem [shape: f32[2,3], index: 12, kind: output, shape index: {}]  }
   0x1   :  { %4623 = vset.pattern.permute.xlu0 %v4718_v0  ;;  %v41_v1 = vld [vmem:[%s5513_s0] sm:$0xff]  ;;  %v68_v3 = vld [vmem:[%s5514_s3 + $0x58] sm:$0xff]  ;;  %v42_v4 = vld [vmem:[%s5513_s0 + $0x8] sm:$0xff]  ;;  %vm72_vm1 = vcmask 818176   ;;  %vm160_vm4 = vcmask 261120   ;;  %vm4720_vm5 = vmmov 0  }
   0x2   :  { %v69_v2 = vld [vmem:[%s5514_s3 + $0x60] sm:$0xf]  ;;  %46 = vperm.xlu0 %4623, %v41_v1   ;;  %v67_v5 = vld [vmem:[%s5514_s3 + $0x50] sm:$0xff]  ;;  %v66_v6 = vld [vmem:[%s5514_s3 + $0x48] sm:$0xff]  ;;  %v44_v18 = vand.u32 127, %v43_v17  ;;  %v4888_v61 = vshrl.u32 %v43_v17, 7 }
   0x3   :  { %4290 = vmatprep.subr.msk.mxu0 %vm79_vm0, %v69_v2  ;;  %v65_v7 = vld [vmem:[%s5514_s3 + $0x40] sm:$0xff]  ;;  %v64_v8 = vld [vmem:[%s5514_s3 + $0x38] sm:$0xff]  ;;  %v63_v9 = vld [vmem:[%s5514_s3 + $0x30] sm:$0xff]  ;;  %vm330_vm6 = vcmask 64512   ;;  %s4725_s15 = smov 120   ;;  %s4726_s16 = smov 56  }
   0x4   :  { %4291 = vmatpush3.msk.msra.mxu0 %vm79_vm0, %v69_v2  ;;  %v62_v10 = vld [vmem:[%s5514_s3 + $0x28] sm:$0xff]  ;;  %v61_v11 = vld [vmem:[%s5514_s3 + $0x20] sm:$0xff]  ;;  %v60_v12 = vld [vmem:[%s5514_s3 + $0x18] sm:$0xff]  ;;  %v4895_v62 = vsub.s32 0, %v4888_v61  ;;  %s4727_s0 = smov 80   ;;  %s4728_s17 = smov 112  }
   0x5   :  { %4292 = vmatprep.subr.mxu0 %v68_v3  ;;  %v59_v13 = vld [vmem:[%s5514_s3 + $0x10] sm:$0xff]  ;;  %v58_v14 = vld [vmem:[%s5514_s3 + $0x8] sm:$0xff]  ;;  %v57_v15 = vld [vmem:[%s5514_s3] sm:$0xff]  ;;  %s4729_s18 = smov 48   ;;  %s4730_s19 = smov 72   ;;  %vm1672_vm7 = vcmask 130048  }
   0x6   :  { %4293 = vmatpush3.msra.mxu0 %v68_v3  ;;  %49 = vperm.xlu0 %4623, %v42_v4   ;;  %v70_v24 = vld [vmem:[%s5515_s4] sm:$0xff]  ;;  %v71_v25 = vld [vmem:[%s5515_s4 + $0x8] sm:$0xff]  ;;  %v231_v41 = vld [vmem:[%s5516_s5 + $0x18] sm:$0xff]  ;;  %s4731_s20 = smov 104   ;;  %s4732_s21 = smov 40   ;;  %vm1675_vm8 = vcmask 195584  }
   0x7   :  { %4294 = vmatprep.subr.mxu0 %v67_v5  ;;  %v230_v42 = vld [vmem:[%s5516_s5 + $0x10] sm:$0xff]  ;;  %4319 = vmatprep.subr.mxu1 %v231_v41  ;;  %v229_v43 = vld [vmem:[%s5516_s5 + $0x8] sm:$0xff]  ;;  %v228_v44 = vld [vmem:[%s5516_s5] sm:$0xff]  ;;  %s4733_s22 = smov 8   ;;  %s4734_s23 = smov 16   ;;  %vm1926_vm9 = vcmask 523264  }
   0x8   :  { %4295 = vmatpush3.msra.mxu0 %v67_v5  ;;  %4320 = vmatpush3.msra.mxu1 %v231_v41  ;;  %v4053_v52 = vld [vmem:[%s5515_s4 + $0x10] ss:$0 sm:$0xff]  ;;  %v4054_v54 = vld [vmem:[%s5515_s4 + $0x11] ss:$0 sm:$0xff]  ;;  %v4900_v63 = vld [vmem:[%s5517_s9] sm:$0xff]  ;;  %s5526_s24 = smov 24  }
   0x9   :  { %4296 = vmatprep.subr.mxu0 %v66_v6  ;;  %4321 = vmatprep.subr.mxu1 %v230_v42  ;;  %v235_v1 = vrot.slane %v4900_v63, %v4895_v62  ;;  %vm3872_vm10 = vcmask 1041409   ;;  %vm4042_vm11 = vcmask 17408  }
   0xa   :  { %4297 = vmatpush3.msra.mxu0 %v66_v6  ;;  %4322 = vmatpush3.msra.mxu1 %v230_v42 }
   0xb   :  { %4298 = vmatprep.subr.mxu0 %v65_v7  ;;  %4323 = vmatprep.subr.mxu1 %v229_v43 }
   0xc   :  { %4299 = vmatpush3.msra.mxu0 %v65_v7  ;;  %4324 = vmatpush3.msra.mxu1 %v229_v43  ;;  %v200_v7 = vld [vmem:[%s5518_s1] sm:$0x3]  ;;  %s4723_s1 = smov 64  }
   0xd   :  { %4300 = vmatprep.subr.mxu0 %v64_v8  ;;  %4325 = vmatprep.subr.mxu1 %v228_v44 }
   0xe   :  { %4301 = vmatpush3.msra.mxu0 %v64_v8  ;;  %4326 = vmatpush3.msra.mxu1 %v228_v44  ;;  %v201_v8 = vcvt.s32.f32 %v200_v7 }
   0xf   :  { %4302 = vmatprep.subr.mxu0 %v63_v9  ;;  %4330 = vmatprep.subr.mxu1 %v4719_v16 }
  0x10   :  { %4303 = vmatpush3.msra.mxu0 %v63_v9  ;;  %v4722_v9 = vmov 1966171168  }
  0x11   :  { %4304 = vmatprep.subr.mxu0 %v62_v10 }
  0x12   :  { %4305 = vmatpush3.msra.mxu0 %v62_v10  ;;  %v206_v10 = vunpack.c.l.s4 %v4722_v9 }
  0x13   :  { %4306 = vmatprep.subr.mxu0 %v61_v11 }
  0x14   :  { %4307 = vmatpush3.msra.mxu0 %v61_v11  ;;  %v202_v11 = vsub.f32 1.0, %v201_v8 }
  0x15   :  { %4308 = vmatprep.subr.mxu0 %v60_v12 }
  0x16   :  { %4309 = vmatpush3.msra.mxu0 %v60_v12  ;;  %v207_v12 = vunpack.c.0.s8 %v206_v10 }
  0x17   :  { %4310 = vmatprep.subr.mxu0 %v59_v13 }
  0x18   :  { %4311 = vmatpush3.msra.mxu0 %v59_v13  ;;  %v203_v13 = vmul.f32 -1e+09, %v202_v11 }
  0x19   :  { %4312 = vmatprep.subr.mxu0 %v58_v14 }
  0x1a   :  { %4313 = vmatpush3.msra.mxu0 %v58_v14  ;;  %v210_v14 = vsub.s32 %v207_v12, %v4888_v61 }
  0x1b   :  { %4314 = vmatprep.subr.mxu0 %v57_v15 }
  0x1c   :  { %4315 = vmatpush3.msra.mxu0 %v57_v15  ;;  %v211_v15 = vrot.slane %v203_v13, %v210_v14 }
  0x1d   :  { %4355 = vmatprep.subr.mxu0 %v4719_v16 }
  0x1e   :  { %v212_v17 = vcombine.high %v211_v15, %v211_v15 }
  0x7d   :  { %v47_v19 = vpop.permute.xlu0 %46 }
  0x7e   :  { %vm51_vm2 = vcmp.eq.s32.totalorder %v44_v18, %v47_v19  ;;  %v226_v19 = vrot.slane %v212_v17, %v210_v14 }
  0x7f   :  { %v4048_v20 = vsel %vm51_vm2, 1.0, %v4719_v16 }
  0x80   :  { %4316 = vmatprep.mubr.msk.f32.mxu0 %vm72_vm1, %v4048_v20 }
  0x81   :  { %v50_v21 = vpop.permute.xlu0 %49 }
  0x82   :  { %vm52_vm3 = vcmp.eq.s32.totalorder %v44_v18, %v50_v21  ;;  %v219_v18 = vrot.slane %v211_v15, %v210_v14 }
  0x83   :  { %v4049_v22 = vsel %vm52_vm3, 1.0, %v4719_v16 }
  0x84   :  { %4317 = vmatmul.mubr.msk.f32.vlgmr.msra.gmra.mxu0 %vm72_vm1, %v4049_v22  ;;  %v4929_v20 = vrot.slane %v219_v18, %v4895_v62  ;;  %v4932_v22 = vrot.slane %v226_v19, %v4895_v62 }
  0x85   :  { %4357 = vmatprep.mubr.msk.f32.mxu0 %vm4720_vm5, %v4719_v16 }
 0x144   :  { %v4318_v23 = vpop.f32.mrf.mxu0 }
 0x145   :  { %v155_v28 = vadd.f32 %v4318_v23, %v71_v25 }
 0x146   :  { %v149_v26 = vpop.f32.mrf.mxu0 }
 0x147   :  { %v150_v27 = vadd.f32 %v149_v26, %v70_v24  ;;  %v164_v30 = vsel %vm160_vm4, %v155_v28, 0.0 }
 0x149   :  { %v161_v29 = vsel %vm160_vm4, %v150_v27, 0.0 }
 0x14a   :  { %162 = vadd.xlane.f32.xlu1 %v161_v29 }
 0x14e   :  { %165 = vadd.xlane.f32.xlu1 %v164_v30 }
 0x1d3   :  { %v163_v31 = vpop.xlane.xlu1 %162 }
 0x1d4   :  { %v168_v32 = vmul.f32 0.03125, %v163_v31 }
 0x1d6   :  { %v170_v33 = vsub.f32 %v150_v27, %v168_v32 }
 0x1d7   :  { %v166_v34 = vpop.xlane.xlu1 %165 }
 0x1d8   :  { %v169_v35 = vmul.f32 0.03125, %v166_v34  ;;  %v172_v36 = vmul.f32 %v170_v33, %v170_v33 }
 0x1da   :  { %v171_v37 = vsub.f32 %v155_v28, %v169_v35  ;;  %v174_v38 = vsel %vm160_vm4, %v172_v36, 0.0 }
 0x1db   :  { %175 = vadd.xlane.f32.xlu0 %v174_v38 }
 0x1dc   :  { %v173_v39 = vmul.f32 %v171_v37, %v171_v37 }
 0x1de   :  { %v177_v40 = vsel %vm160_vm4, %v173_v39, 0.0 }
 0x1df   :  { %178 = vadd.xlane.f32.xlu1 %v177_v40 }
 0x264   :  { %v176_v45 = vpop.xlane.xlu0 %175 }
 0x265   :  { %v180_v46 = vmul.f32 0.03125, %v176_v45 }
 0x267   :  { %v182_v47 = vadd.f32 1e-12, %v180_v46 }
 0x268   :  { %v179_v48 = vpop.xlane.xlu1 %178 }
 0x269   :  { %4624 = vrsqrt.f32 %v182_v47  ;;  %v181_v49 = vmul.f32 0.03125, %v179_v48 }
 0x26b   :  { %v183_v50 = vadd.f32 1e-12, %v181_v49 }
 0x26d   :  { %4626 = vrsqrt.f32 %v183_v50 }
 0x276   :  { %v4625_v51 = vpop.eup %4624 }
 0x277   :  { %v186_v53 = vmul.f32 %v4625_v51, %v170_v33 }
 0x279   :  { %v192_v55 = vmul.f32 %v4053_v52, %v186_v53 }
 0x27a   :  { %v4627_v56 = vpop.eup %4626 }
 0x27b   :  { %v187_v57 = vmul.f32 %v4627_v56, %v171_v37  ;;  %v4879_v58 = vadd.f32 %v4054_v54, %v192_v55 }
 0x27d   :  { %v193_v59 = vmul.f32 %v4053_v52, %v187_v57  ;;  %4327 = vmatprep.mubr.msk.f32.mxu1 %vm160_vm4, %v4879_v58 }
 0x27f   :  { %v4883_v60 = vadd.f32 %v4054_v54, %v193_v59 }
 0x281   :  { %4328 = vmatmul.mubr.msk.f32.vlgmr.msra.gmra.mxu1 %vm160_vm4, %v4883_v60 }
 0x282   :  { %4332 = vmatprep.mubr.msk.f32.mxu1 %vm4720_vm5, %v4719_v16 }
 0x341   :  { %v4329_v0 = vpop.f32.mrf.mxu1 }
 0x342   :  { %v4908_v4 = vadd.f32 %v4329_v0, %v235_v1 }
 0x343   :  { %v308_v2 = vpop.f32.mrf.mxu1 }
 0x344   :  { %v4904_v3 = vadd.f32 %v308_v2, %v235_v1 }
 0x346   :  { %328 = vrot.lane.b32.xlu1 %v4904_v3, %s4721_s30 }
 0x34a   :  { %406 = vrot.lane.b32.xlu1 %v4908_v4, %s4721_s30 }
 0x3b8   :  { %v329_v5 = vpop.permute.xlu1 %328 }
 0x3b9   :  { %4331 = vmatpush3.xpose.msk.msra.mxu1 %vm330_vm6, %v329_v5 }
 0x3ba   :  { %4335 = vmatprep.subr.mxu1 %v4719_v16 }
 0x3bc   :  { %4333 = vmatmul.mubr.msk.f32.vlgmr.msra.gmra.mxu1 %vm330_vm6, %v4904_v3  ;;  %v407_v6 = vpop.permute.xlu1 %406 }
 0x3bd   :  { %4336 = vmatpush3.xpose.msk.msra.mxu1 %vm330_vm6, %v407_v6  ;;  %4337 = vmatprep.mubr.msk.f32.mxu1 %vm4720_vm5, %v4719_v16 }
 0x3be   :  { %4340 = vmatprep.subr.mxu1 %v4719_v16 }
 0x3c0   :  { %4338 = vmatmul.mubr.msk.f32.vlgmr.msra.gmra.mxu1 %vm330_vm6, %v4908_v4 }
 0x3c1   :  { %4342 = vmatprep.mubr.msk.f32.mxu1 %vm4720_vm5, %v4719_v16 }
 0x47c   :  { %v401_v21 = vpop.f32.mrf.mxu1 }
 0x47d   :  { %v402_v23 = vadd.f32 %v401_v21, %v4929_v20 }
 0x47e   :  { %v4334_v24 = vpop.f32.mrf.mxu1 }
 0x47f   :  { %v482_v25 = vsel %vm330_vm6, %v402_v23, -inf }
 0x480   :  { %483 = vmax.xlane.f32.xlu1 %v482_v25  ;;  %v478_v26 = vpop.f32.mrf.mxu1 }
 0x481   :  { %v479_v27 = vadd.f32 %v478_v26, %v4932_v22 }
 0x482   :  { %v4339_v28 = vpop.f32.mrf.mxu1 }
 0x483   :  { %v485_v29 = vsel %vm330_vm6, %v479_v27, -inf }
 0x484   :  { %486 = vmax.xlane.f32.xlu0 %v485_v29 }
 0x491   :  { %580 = vrot.lane.b32.xlu1 %v4908_v4, %s4723_s1 }
 0x49a   :  { %504 = vrot.lane.b32.xlu0 %v4904_v3, %s4723_s1 }
 0x49e   :  { %658 = vrot.lane.b32.xlu0 %v4904_v3, %s4724_s14 }
 0x4a2   :  { %736 = vrot.lane.b32.xlu0 %v4908_v4, %s4724_s14 }
 0x509   :  { %v484_v30 = vpop.xlane.xlu1 %483 }
 0x50a   :  { %v488_v31 = vsub.f32 %v402_v23, %v484_v30 }
 0x50c   :  { %v490_v32 = vmul.f32 1.442695, %v488_v31 }
 0x50d   :  { %v487_v33 = vpop.xlane.xlu0 %486  ;;  %v581_v49 = vpop.permute.xlu1 %580 }
 0x50e   :  { %4628 = vpow2.f32 %v490_v32  ;;  %v489_v34 = vsub.f32 %v479_v27, %v487_v33 }
 0x510   :  { %v492_v35 = vmul.f32 1.442695, %v489_v34 }
 0x511   :  { %v505_v36 = vpop.permute.xlu0 %504 }
 0x512   :  { %4630 = vpow2.f32 %v492_v35  ;;  %4341 = vmatpush3.msra.mxu1 %v505_v36 }
 0x513   :  { %4345 = vmatprep.subr.mxu1 %v4719_v16 }
 0x515   :  { %v659_v37 = vpop.permute.xlu0 %658 }
 0x519   :  { %v737_v38 = vpop.permute.xlu0 %736 }
 0x51a   :  { %4356 = vmatpush3.xpose.msk.msra.mxu0 %vm330_vm6, %v737_v38 }
 0x51b   :  { %v4629_v39 = vpop.eup %4628  ;;  %4365 = vmatprep.subr.mxu0 %v4719_v16 }
 0x51c   :  { %v494_v40 = vsel %vm330_vm6, %v4629_v39, 0.0 }
 0x51d   :  { %495 = vadd.xlane.f32.xlu0 %v494_v40 }
 0x51f   :  { %v4631_v41 = vpop.eup %4630 }
 0x520   :  { %v497_v42 = vsel %vm330_vm6, %v4631_v41, 0.0 }
 0x521   :  { %498 = vadd.xlane.f32.xlu0 %v497_v42 }
 0x537   :  { %656 = vrot.lane.b32.xlu0 %v4904_v3, %s4725_s15 }
 0x53b   :  { %734 = vrot.lane.b32.xlu0 %v4908_v4, %s4725_s15 }
 0x5a6   :  { %v496_v43 = vpop.xlane.xlu0 %495 }
 0x5a7   :  { %4632 = vrcp.f32 %v496_v43 }
 0x5aa   :  { %v499_v44 = vpop.xlane.xlu0 %498 }
 0x5ab   :  { %4634 = vrcp.f32 %v499_v44 }
 0x5ae   :  { %v657_v45 = vpop.permute.xlu0 %656 }
 0x5b2   :  { %v735_v46 = vpop.permute.xlu0 %734 }
 0x5b3   :  { %4358 = vmatmul.mubr.msk.f32.vlgmr.msra.gmra.mxu0 %vm330_vm6, %v735_v46 }
 0x5b4   :  { %v4633_v47 = vpop.eup %4632  ;;  %4367 = vmatprep.mubr.msk.f32.mxu0 %vm4720_vm5, %v4719_v16 }
 0x5b5   :  { %v501_v48 = vmul.f32 %v4633_v47, %v4629_v39 }
 0x5b7   :  { %4343 = vmatmul.mubr.msk.f32.vlgmr.msra.gmra.mxu1 %vm330_vm6, %v501_v48 }
 0x5b8   :  { %v4635_v50 = vpop.eup %4634  ;;  %4346 = vmatpush3.msra.mxu1 %v581_v49  ;;  %4347 = vmatprep.mubr.msk.f32.mxu1 %vm4720_vm5, %v4719_v16 }
 0x5b9   :  { %4350 = vmatprep.subr.mxu1 %v4719_v16  ;;  %v503_v51 = vmul.f32 %v4635_v50, %v4631_v41 }
 0x5bb   :  { %4348 = vmatmul.mubr.msk.f32.vlgmr.msra.gmra.mxu1 %vm330_vm6, %v503_v51 }
 0x5bc   :  { %4351 = vmatpush3.xpose.msk.msra.mxu1 %vm330_vm6, %v659_v37  ;;  %4352 = vmatprep.mubr.msk.f32.mxu1 %vm4720_vm5, %v4719_v16 }
 0x5bd   :  { %4360 = vmatprep.subr.mxu1 %v4719_v16 }
 0x5bf   :  { %4353 = vmatmul.mubr.msk.f32.vlgmr.msra.gmra.mxu1 %vm330_vm6, %v657_v45 }
 0x5c0   :  { %4362 = vmatprep.mubr.msk.f32.mxu1 %vm4720_vm5, %v4719_v16 }
 0x673   :  { %v808_v52 = vpop.f32.mrf.mxu0 }
 0x674   :  { %v809_v53 = vadd.f32 %v808_v52, %v4932_v22 }
 0x675   :  { %v4359_v54 = vpop.f32.mrf.mxu0 }
 0x676   :  { %v815_v55 = vsel %vm330_vm6, %v809_v53, -inf }
 0x677   :  { %v4972_v56 = vpop.f32.mrf.mxu1  ;;  %816 = vmax.xlane.f32.xlu0 %v815_v55 }
 0x679   :  { %v4344_v57 = vpop.f32.mrf.mxu1 }
 0x67b   :  { %v4974_v59 = vpop.f32.mrf.mxu1 }
 0x67d   :  { %v4349_v0 = vpop.f32.mrf.mxu1 }
 0x67f   :  { %v730_v1 = vpop.f32.mrf.mxu1 }
 0x680   :  { %v731_v2 = vadd.f32 %v730_v1, %v4929_v20 }
 0x681   :  { %v4354_v5 = vpop.f32.mrf.mxu1 }
 0x682   :  { %v812_v6 = vsel %vm330_vm6, %v731_v2, -inf }
 0x683   :  { %813 = vmax.xlane.f32.xlu1 %v812_v6 }
 0x68d   :  { %834 = vrot.lane.b32.xlu0 %v4904_v3, %s4726_s16 }
 0x700   :  { %v817_v7 = vpop.xlane.xlu0 %816 }
 0x701   :  { %v819_v8 = vsub.f32 %v809_v53, %v817_v7 }
 0x703   :  { %v822_v9 = vmul.f32 1.442695, %v819_v8 }
 0x704   :  { %v835_v10 = vpop.permute.xlu0 %834 }
 0x705   :  { %4636 = vpow2.f32 %v822_v9  ;;  %4361 = vmatpush3.msra.mxu1 %v835_v10 }
 0x706   :  { %4370 = vmatprep.subr.mxu1 %v4719_v16 }
 0x70c   :  { %v814_v11 = vpop.xlane.xlu1 %813 }
 0x70d   :  { %v818_v12 = vsub.f32 %v731_v2, %v814_v11 }
 0x70f   :  { %v820_v13 = vmul.f32 1.442695, %v818_v12 }
 0x711   :  { %4638 = vpow2.f32 %v820_v13 }
 0x712   :  { %v4637_v14 = vpop.eup %4636 }
 0x713   :  { %v827_v15 = vsel %vm330_vm6, %v4637_v14, 0.0 }
 0x714   :  { %828 = vadd.xlane.f32.xlu1 %v827_v15 }
 0x71e   :  { %v4639_v17 = vpop.eup %4638 }
 0x71f   :  { %v824_v18 = vsel %vm330_vm6, %v4639_v17, 0.0 }
 0x720   :  { %825 = vadd.xlane.f32.xlu0 %v824_v18 }
 0x725   :  { %910 = vrot.lane.b32.xlu1 %v4908_v4, %s4726_s16 }
 0x729   :  { %988 = vrot.lane.b32.xlu1 %v4904_v3, %s4727_s0 }
 0x72d   :  { %986 = vrot.lane.b32.xlu1 %v4904_v3, %s4728_s17 }
 0x736   :  { %1066 = vrot.lane.b32.xlu0 %v4908_v4, %s4727_s0 }
 0x73a   :  { %1064 = vrot.lane.b32.xlu0 %v4908_v4, %s4728_s17 }
 0x79d   :  { %v829_v19 = vpop.xlane.xlu1 %828 }
 0x79e   :  { %4640 = vrcp.f32 %v829_v19 }
 0x7a1   :  { %v911_v21 = vpop.permute.xlu1 %910 }
 0x7a2   :  { %4366 = vmatpush3.msra.mxu0 %v911_v21 }
 0x7a3   :  { %4375 = vmatprep.subr.mxu0 %v4719_v16 }
 0x7a5   :  { %v989_v29 = vpop.permute.xlu1 %988 }
 0x7a9   :  { %v826_v23 = vpop.xlane.xlu0 %825  ;;  %v987_v31 = vpop.permute.xlu1 %986 }
 0x7aa   :  { %4642 = vrcp.f32 %v826_v23 }
 0x7ab   :  { %v4641_v24 = vpop.eup %4640 }
 0x7ac   :  { %v833_v25 = vmul.f32 %v4641_v24, %v4637_v14 }
 0x7ad   :  { %v1067_v26 = vpop.permute.xlu0 %1066 }
 0x7ae   :  { %4368 = vmatmul.mubr.msk.f32.vlgmr.msra.gmra.mxu0 %vm330_vm6, %v833_v25 }
 0x7af   :  { %4376 = vmatpush3.xpose.msk.msra.mxu0 %vm330_vm6, %v1067_v26  ;;  %4377 = vmatprep.mubr.msk.f32.mxu0 %vm4720_vm5, %v4719_v16 }
 0x7b0   :  { %4385 = vmatprep.subr.mxu0 %v4719_v16 }
 0x7b1   :  { %v1065_v27 = vpop.permute.xlu0 %1064 }
 0x7b2   :  { %4378 = vmatmul.mubr.msk.f32.vlgmr.msra.gmra.mxu0 %vm330_vm6, %v1065_v27 }
 0x7b3   :  { %4387 = vmatprep.mubr.msk.f32.mxu0 %vm4720_vm5, %v4719_v16 }
 0x7b7   :  { %v4643_v28 = vpop.eup %4642 }
 0x7b8   :  { %v831_v30 = vmul.f32 %v4643_v28, %v4639_v17 }
 0x7ba   :  { %4363 = vmatmul.mubr.msk.f32.vlgmr.msra.gmra.mxu1 %vm330_vm6, %v831_v30 }
 0x7bb   :  { %4371 = vmatpush3.xpose.msk.msra.mxu1 %vm330_vm6, %v989_v29  ;;  %4372 = vmatprep.mubr.msk.f32.mxu1 %vm4720_vm5, %v4719_v16 }
 0x7bc   :  { %4380 = vmatprep.subr.mxu1 %v4719_v16 }
 0x7be   :  { %4373 = vmatmul.mubr.msk.f32.vlgmr.msra.gmra.mxu1 %vm330_vm6, %v987_v31 }
 0x7bf   :  { %4382 = vmatprep.mubr.msk.f32.mxu1 %vm4720_vm5, %v4719_v16 }
 0x86e   :  { %v5010_v32 = vpop.f32.mrf.mxu0 }
 0x870   :  { %v4369_v33 = vpop.f32.mrf.mxu0 }
 0x872   :  { %v1138_v34 = vpop.f32.mrf.mxu0 }
 0x873   :  { %v1139_v35 = vadd.f32 %v1138_v34, %v4932_v22 }
 0x874   :  { %v4379_v36 = vpop.f32.mrf.mxu0 }
 0x875   :  { %v1145_v37 = vsel %vm330_vm6, %v1139_v35, -inf }
 0x876   :  { %1146 = vmax.xlane.f32.xlu0 %v1145_v37 }
 0x87a   :  { %v5014_v38 = vpop.f32.mrf.mxu1 }
 0x87c   :  { %v4364_v39 = vpop.f32.mrf.mxu1 }
 0x87e   :  { %v1060_v40 = vpop.f32.mrf.mxu1 }
 0x87f   :  { %v1061_v41 = vadd.f32 %v1060_v40, %v4929_v20 }
 0x880   :  { %v4374_v42 = vpop.f32.mrf.mxu1 }
 0x881   :  { %v1142_v43 = vsel %vm330_vm6, %v1061_v41, -inf }
 0x882   :  { %1143 = vmax.xlane.f32.xlu1 %v1142_v43 }
 0x88c   :  { %1164 = vrot.lane.b32.xlu0 %v4904_v3, %s4729_s18 }
 0x8ff   :  { %v1147_v44 = vpop.xlane.xlu0 %1146 }
 0x900   :  { %v1149_v45 = vsub.f32 %v1139_v35, %v1147_v44  ;;  %v1679_v44 = vld [vmem:[%s5519_s6 + $0x8] sm:$0xff] }
 0x902   :  { %v1152_v46 = vmul.f32 1.442695, %v1149_v45 }
 0x903   :  { %v1165_v47 = vpop.permute.xlu0 %1164 }
 0x904   :  { %4644 = vpow2.f32 %v1152_v46  ;;  %4381 = vmatpush3.msra.mxu1 %v1165_v47  ;;  %v1678_v46 = vld [vmem:[%s5519_s6] sm:$0xff] }
 0x905   :  { %4390 = vmatprep.subr.mxu1 %v4719_v16 }
 0x90b   :  { %v1144_v48 = vpop.xlane.xlu1 %1143 }
 0x90c   :  { %v1148_v49 = vsub.f32 %v1061_v41, %v1144_v48 }
 0x90e   :  { %v1150_v50 = vmul.f32 1.442695, %v1148_v49 }
 0x910   :  { %4646 = vpow2.f32 %v1150_v50 }
 0x911   :  { %v4645_v51 = vpop.eup %4644 }
 0x912   :  { %v1157_v52 = vsel %vm330_vm6, %v4645_v51, 0.0 }
 0x913   :  { %1158 = vadd.xlane.f32.xlu1 %v1157_v52 }
 0x91d   :  { %v4647_v53 = vpop.eup %4646 }
 0x91e   :  { %v1154_v54 = vsel %vm330_vm6, %v4647_v53, 0.0 }
 0x91f   :  { %1155 = vadd.xlane.f32.xlu0 %v1154_v54 }
 0x924   :  { %1240 = vrot.lane.b32.xlu1 %v4908_v4, %s4729_s18 }
 0x928   :  { %1318 = vrot.lane.b32.xlu1 %v4904_v3, %s4730_s19 }
 0x92c   :  { %1316 = vrot.lane.b32.xlu1 %v4904_v3, %s4731_s20 }
 0x935   :  { %1396 = vrot.lane.b32.xlu0 %v4908_v4, %s4730_s19 }
 0x939   :  { %1394 = vrot.lane.b32.xlu0 %v4908_v4, %s4731_s20 }
 0x99c   :  { %v1159_v55 = vpop.xlane.xlu1 %1158 }
 0x99d   :  { %4648 = vrcp.f32 %v1159_v55 }
 0x9a0   :  { %v1241_v57 = vpop.permute.xlu1 %1240 }
 0x9a1   :  { %4386 = vmatpush3.msra.mxu0 %v1241_v57 }
 0x9a2   :  { %4395 = vmatprep.subr.mxu0 %v4719_v16 }
 0x9a4   :  { %v1319_v8 = vpop.permute.xlu1 %1318 }
 0x9a8   :  { %v1156_v0 = vpop.xlane.xlu0 %1155  ;;  %v1317_v10 = vpop.permute.xlu1 %1316 }
 0x9a9   :  { %4650 = vrcp.f32 %v1156_v0 }
 0x9aa   :  { %v4649_v1 = vpop.eup %4648 }
 0x9ab   :  { %v1163_v2 = vmul.f32 %v4649_v1, %v4645_v51 }
 0x9ac   :  { %v1397_v5 = vpop.permute.xlu0 %1396 }
 0x9ad   :  { %4388 = vmatmul.mubr.msk.f32.vlgmr.msra.gmra.mxu0 %vm330_vm6, %v1163_v2 }
 0x9ae   :  { %4396 = vmatpush3.xpose.msk.msra.mxu0 %vm330_vm6, %v1397_v5  ;;  %4397 = vmatprep.mubr.msk.f32.mxu0 %vm4720_vm5, %v4719_v16 }
 0x9af   :  { %4405 = vmatprep.subr.mxu0 %v4719_v16 }
 0x9b0   :  { %v1395_v6 = vpop.permute.xlu0 %1394 }
 0x9b1   :  { %4398 = vmatmul.mubr.msk.f32.vlgmr.msra.gmra.mxu0 %vm330_vm6, %v1395_v6 }
 0x9b2   :  { %4407 = vmatprep.mubr.msk.f32.mxu0 %vm4720_vm5, %v4719_v16 }
 0x9b6   :  { %v4651_v7 = vpop.eup %4650 }
 0x9b7   :  { %v1161_v9 = vmul.f32 %v4651_v7, %v4647_v53 }
 0x9b9   :  { %4383 = vmatmul.mubr.msk.f32.vlgmr.msra.gmra.mxu1 %vm330_vm6, %v1161_v9 }
 0x9ba   :  { %4391 = vmatpush3.xpose.msk.msra.mxu1 %vm330_vm6, %v1319_v8  ;;  %4392 = vmatprep.mubr.msk.f32.mxu1 %vm4720_vm5, %v4719_v16 }
 0x9bb   :  { %4400 = vmatprep.subr.mxu1 %v4719_v16 }
 0x9bd   :  { %4393 = vmatmul.mubr.msk.f32.vlgmr.msra.gmra.mxu1 %vm330_vm6, %v1317_v10 }
 0x9be   :  { %4402 = vmatprep.mubr.msk.f32.mxu1 %vm4720_vm5, %v4719_v16 }
 0xa6d   :  { %v1312_v11 = vpop.f32.mrf.mxu0 }
 0xa6f   :  { %v4389_v12 = vpop.f32.mrf.mxu0 }
 0xa71   :  { %v1468_v13 = vpop.f32.mrf.mxu0 }
 0xa72   :  { %v1469_v14 = vadd.f32 %v1468_v13, %v4932_v22 }
 0xa73   :  { %v4399_v15 = vpop.f32.mrf.mxu0 }
 0xa74   :  { %v1475_v17 = vsel %vm330_vm6, %v1469_v14, -inf }
 0xa75   :  { %1476 = vmax.xlane.f32.xlu0 %v1475_v17 }
 0xa79   :  { %v1236_v18 = vpop.f32.mrf.mxu1 }
 0xa7b   :  { %v4384_v19 = vpop.f32.mrf.mxu1 }
 0xa7d   :  { %v1390_v21 = vpop.f32.mrf.mxu1 }
 0xa7e   :  { %v1391_v23 = vadd.f32 %v1390_v21, %v4929_v20 }
 0xa7f   :  { %v4394_v24 = vpop.f32.mrf.mxu1 }
 0xa80   :  { %v1472_v25 = vsel %vm330_vm6, %v1391_v23, -inf }
 0xa81   :  { %1473 = vmax.xlane.f32.xlu1 %v1472_v25 }
 0xafe   :  { %v1477_v26 = vpop.xlane.xlu0 %1476 }
 0xaff   :  { %v1479_v27 = vsub.f32 %v1469_v14, %v1477_v26 }
 0xb01   :  { %v1482_v28 = vmul.f32 1.442695, %v1479_v27  ;;  %v1809_v27 = vld [vmem:[%s5520_s7 + $0x10] sm:$0xff] }
 0xb03   :  { %4652 = vpow2.f32 %v1482_v28  ;;  %v1808_v28 = vld [vmem:[%s5520_s7 + $0x8] sm:$0xff] }
 0xb0a   :  { %v1474_v29 = vpop.xlane.xlu1 %1473 }
 0xb0b   :  { %v1478_v30 = vsub.f32 %v1391_v23, %v1474_v29  ;;  %v1807_v29 = vld [vmem:[%s5520_s7] sm:$0xff] }
 0xb0d   :  { %v1480_v31 = vmul.f32 1.442695, %v1478_v30 }
 0xb0f   :  { %4654 = vpow2.f32 %v1480_v31 }
 0xb10   :  { %v4653_v33 = vpop.eup %4652 }
 0xb11   :  { %v1487_v34 = vsel %vm330_vm6, %v4653_v33, 0.0 }
 0xb12   :  { %1488 = vadd.xlane.f32.xlu1 %v1487_v34 }
 0xb1c   :  { %v4655_v35 = vpop.eup %4654 }
 0xb1d   :  { %v1484_v36 = vsel %vm330_vm6, %v4655_v35, 0.0 }
 0xb1e   :  { %1485 = vadd.xlane.f32.xlu0 %v1484_v36 }
 0xb23   :  { %1570 = vrot.lane.b32.xlu1 %v4908_v4, %s4732_s21 }
 0xb27   :  { %1648 = vrot.lane.b32.xlu1 %v5014_v38, %s4733_s22 }
 0xb2b   :  { %1656 = vrot.lane.b32.xlu1 %v1236_v18, %s4734_s23 }
 0xb34   :  { %1494 = vrot.lane.b32.xlu0 %v4904_v3, %s4732_s21  ;;  %v1681_v3 = vld [vmem:[%s5519_s6 + $0x18] sm:$0xff] }
 0xb38   :  { %1650 = vrot.lane.b32.xlu0 %v5010_v32, %s4733_s22  ;;  %v1680_v32 = vld [vmem:[%s5519_s6 + $0x10] sm:$0xff] }
 0xb3c   :  { %1658 = vrot.lane.b32.xlu0 %v1312_v11, %s4734_s23 }
 0xb9b   :  { %v1489_v37 = vpop.xlane.xlu1 %1488 }
 0xb9c   :  { %4656 = vrcp.f32 %v1489_v37  ;;  %v1797_v37 = vsub.s32 2, %v4888_v61 }
 0xb9f   :  { %v1571_v39 = vpop.permute.xlu1 %1570 }
 0xba0   :  { %4406 = vmatpush3.msra.mxu0 %v1571_v39 }
 0xba3   :  { %v1649_v51 = vpop.permute.xlu1 %1648 }
 0xba4   :  { %v1670_v54 = vsel %vm330_vm6, %v4972_v56, %v1649_v51  ;;  %v1684_v56 = vsub.s32 1, %v4888_v61  ;;  %v1916_v51 = vld [vmem:[%s5521_s8 + $0x10] sm:$0xff] }
 0xba6   :  { %v1685_v7 = vrot.slane %v4900_v63, %v1684_v56 }
 0xba7   :  { %v1486_v4 = vpop.xlane.xlu0 %1485  ;;  %v1657_v53 = vpop.permute.xlu1 %1656 }
 0xba8   :  { %4658 = vrcp.f32 %v1486_v4  ;;  %v1673_v57 = vsel %vm1672_vm7, %v1670_v54, %v1657_v53  ;;  %v1798_v4 = vrot.slane %v4900_v63, %v1797_v37  ;;  %v1914_v53 = vld [vmem:[%s5521_s8] sm:$0xff]  ;;  %v1813_v54 = vsub.s32 4, %v4888_v61 }
 0xba9   :  { %v4657_v40 = vpop.eup %4656 }
 0xbaa   :  { %v1493_v41 = vmul.f32 %v4657_v40, %v4653_v33  ;;  %v1803_v40 = vsub.s32 3, %v4888_v61 }
 0xbab   :  { %v1495_v38 = vpop.permute.xlu0 %1494 }
 0xbac   :  { %4401 = vmatpush3.msra.mxu1 %v1495_v38  ;;  %4408 = vmatmul.mubr.msk.f32.vlgmr.msra.gmra.mxu0 %vm330_vm6, %v1493_v41 }
 0xbad   :  { %4410 = vmatprep.subr.mxu1 %v1681_v3 }
 0xbaf   :  { %v1651_v50 = vpop.permute.xlu0 %1650 }
 0xbb0   :  { %v1671_v0 = vsel %vm330_vm6, %v4974_v59, %v1651_v50  ;;  %v1917_v50 = vld [vmem:[%s5521_s8 + $0x18] sm:$0xff] }
 0xbb3   :  { %v1659_v52 = vpop.permute.xlu0 %1658 }
 0xbb4   :  { %v1674_v2 = vsel %vm1672_vm7, %v1671_v0, %v1659_v52  ;;  %v1915_v52 = vld [vmem:[%s5521_s8 + $0x8] sm:$0xff] }
 0xbb5   :  { %v4659_v42 = vpop.eup %4658 }
 0xbb6   :  { %v1491_v43 = vmul.f32 %v4659_v42, %v4655_v35 }
 0xbb8   :  { %4403 = vmatmul.mubr.msk.f32.vlgmr.msra.gmra.mxu1 %vm330_vm6, %v1491_v43 }
 0xbb9   :  { %4411 = vmatpush3.msra.mxu1 %v1681_v3  ;;  %v1804_v3 = vrot.slane %v4900_v63, %v1803_v40 }
 0xbba   :  { %4412 = vmatprep.subr.mxu1 %v1680_v32 }
 0xbbb   :  { %4413 = vmatpush3.msra.mxu1 %v1680_v32 }
 0xbbc   :  { %4414 = vmatprep.subr.mxu1 %v1679_v44 }
 0xbbd   :  { %4415 = vmatpush3.msra.mxu1 %v1679_v44 }
 0xbbe   :  { %4416 = vmatprep.subr.mxu1 %v1678_v46 }
 0xbbf   :  { %4417 = vmatpush3.msra.mxu1 %v1678_v46  ;;  %v1921_v46 = vld [vmem:[%s5521_s8 + $0x38] sm:$0xff] }
 0xbc0   :  { %4432 = vmatprep.subr.mxu1 %v1921_v46 }
 0xc6c   :  { %v1642_v45 = vpop.f32.mrf.mxu0 }
 0xc6d   :  { %1666 = vrot.lane.b32.xlu0 %v1642_v45, %s5526_s24 }
 0xc6e   :  { %v4409_v47 = vpop.f32.mrf.mxu0 }
 0xc6f   :  { %v1920_v47 = vld [vmem:[%s5521_s8 + $0x30] sm:$0xff] }
 0xc78   :  { %v1566_v48 = vpop.f32.mrf.mxu1 }
 0xc79   :  { %1664 = vrot.lane.b32.xlu1 %v1566_v48, %s5526_s24  ;;  %v1919_v48 = vld [vmem:[%s5521_s8 + $0x28] sm:$0xff] }
 0xc7a   :  { %v4404_v49 = vpop.f32.mrf.mxu1 }
 0xc7b   :  { %v1918_v49 = vld [vmem:[%s5521_s8 + $0x20] sm:$0xff] }
 0xcdf   :  { %v1667_v55 = vpop.permute.xlu0 %1666 }
 0xce0   :  { %v1677_v6 = vsel %vm1675_vm8, %v1674_v2, %v1667_v55  ;;  %v1814_v55 = vrot.slane %v4900_v63, %v1813_v54 }
 0xceb   :  { %v1665_v1 = vpop.permute.xlu1 %1664 }
 0xcec   :  { %v1676_v5 = vsel %vm1675_vm8, %v1673_v57, %v1665_v1 }
 0xced   :  { %4418 = vmatprep.mubr.msk.f32.mxu1 %vm160_vm4, %v1676_v5 }
 0xcee   :  { %4419 = vmatmul.mubr.msk.f32.vlgmr.msra.gmra.mxu1 %vm160_vm4, %v1677_v6 }
 0xcef   :  { %4433 = vmatpush3.msra.mxu1 %v1921_v46  ;;  %v4088_v46 = vld [vmem:[%s5516_s5 + $0x20] sm:$0xff] }
 0xcf0   :  { %4434 = vmatprep.subr.mxu1 %v1920_v47 }
 0xcf1   :  { %4435 = vmatpush3.msra.mxu1 %v1920_v47 }
 0xcf2   :  { %4436 = vmatprep.subr.mxu1 %v1919_v48 }
 0xcf3   :  { %4437 = vmatpush3.msra.mxu1 %v1919_v48 }
 0xcf4   :  { %4438 = vmatprep.subr.mxu1 %v1918_v49 }
 0xcf5   :  { %4439 = vmatpush3.msra.mxu1 %v1918_v49 }
 0xcf6   :  { %4440 = vmatprep.subr.mxu1 %v1917_v50 }
 0xcf7   :  { %4441 = vmatpush3.msra.mxu1 %v1917_v50 }
 0xcf8   :  { %4442 = vmatprep.subr.mxu1 %v1916_v51 }
 0xcf9   :  { %4443 = vmatpush3.msra.mxu1 %v1916_v51 }
 0xcfa   :  { %4444 = vmatprep.subr.mxu1 %v1915_v52 }
 0xcfb   :  { %4445 = vmatpush3.msra.mxu1 %v1915_v52 }
 0xcfc   :  { %4446 = vmatprep.subr.mxu1 %v1914_v53 }
 0xcfd   :  { %4447 = vmatpush3.msra.mxu1 %v1914_v53  ;;  %v2038_v53 = vsub.s32 6, %v4888_v61 }
 0xcfe   :  { %4472 = vmatprep.subr.mxu1 %v4719_v16 }
 0xdae   :  { %v4420_v8 = vpop.f32.mrf.mxu1 }
 0xdaf   :  { %v1764_v9 = vadd.f32 %v4420_v8, %v1685_v7 }
 0xdb0   :  { %v1758_v59 = vpop.f32.mrf.mxu1 }
 0xdb1   :  { %v1759_v10 = vadd.f32 %v1758_v59, %v1685_v7  ;;  %v1768_v11 = vadd.f32 %v1764_v9, %v4883_v60 }
 0xdb3   :  { %v1772_v12 = vsel %vm160_vm4, %v1768_v11, 0.0  ;;  %v1767_v13 = vadd.f32 %v1759_v10, %v4879_v58  ;;  %v1810_v58 = vld [vmem:[%s5520_s7 + $0x18] sm:$0xff] }
 0xdb4   :  { %1773 = vadd.xlane.f32.xlu0 %v1772_v12  ;;  %4421 = vmatprep.subr.mxu0 %v1810_v58 }
 0xdb5   :  { %v1769_v14 = vsel %vm160_vm4, %v1767_v13, 0.0  ;;  %4422 = vmatpush3.msra.mxu0 %v1810_v58 }
 0xdb6   :  { %1770 = vadd.xlane.f32.xlu1 %v1769_v14  ;;  %4423 = vmatprep.subr.mxu0 %v1809_v27 }
 0xdb7   :  { %4424 = vmatpush3.msra.mxu0 %v1809_v27 }
 0xdb8   :  { %4425 = vmatprep.subr.mxu0 %v1808_v28 }
 0xdb9   :  { %4426 = vmatpush3.msra.mxu0 %v1808_v28 }
 0xdba   :  { %4427 = vmatprep.subr.mxu0 %v1807_v29 }
 0xdbb   :  { %4428 = vmatpush3.msra.mxu0 %v1807_v29 }
 0xe3d   :  { %v1774_v15 = vpop.xlane.xlu0 %1773 }
 0xe3e   :  { %v1776_v17 = vmul.f32 0.03125, %v1774_v15 }
 0xe3f   :  { %v1771_v18 = vpop.xlane.xlu1 %1770 }
 0xe40   :  { %v1778_v19 = vsub.f32 %v1768_v11, %v1776_v17  ;;  %v1775_v21 = vmul.f32 0.03125, %v1771_v18 }
 0xe42   :  { %v1777_v23 = vsub.f32 %v1767_v13, %v1775_v21  ;;  %v1780_v24 = vmul.f32 %v1778_v19, %v1778_v19 }
 0xe44   :  { %v1784_v25 = vsel %vm160_vm4, %v1780_v24, 0.0  ;;  %v1779_v26 = vmul.f32 %v1777_v23, %v1777_v23 }
 0xe45   :  { %1785 = vadd.xlane.f32.xlu1 %v1784_v25  ;;  %v1924_v25 = vsub.s32 5, %v4888_v61 }
 0xe46   :  { %v1781_v60 = vsel %vm160_vm4, %v1779_v26, 0.0 }
 0xe47   :  { %1782 = vadd.xlane.f32.xlu0 %v1781_v60  ;;  %v1925_v26 = vrot.slane %v4900_v63, %v1924_v25 }
 0xece   :  { %v1786_v30 = vpop.xlane.xlu1 %1785 }
 0xecf   :  { %v1788_v31 = vmul.f32 0.03125, %v1786_v30 }
 0xed0   :  { %v1783_v33 = vpop.xlane.xlu0 %1782 }
 0xed1   :  { %v1790_v34 = vadd.f32 1e-12, %v1788_v31  ;;  %v1787_v35 = vmul.f32 0.03125, %v1783_v33 }
 0xed3   :  { %4660 = vrsqrt.f32 %v1790_v34  ;;  %v1789_v36 = vadd.f32 1e-12, %v1787_v35 }
 0xed5   :  { %4662 = vrsqrt.f32 %v1789_v36 }
 0xee0   :  { %v4661_v39 = vpop.eup %4660 }
 0xee1   :  { %v1794_v41 = vmul.f32 %v4661_v39, %v1778_v19 }
 0xee2   :  { %v4663_v38 = vpop.eup %4662 }
 0xee3   :  { %v1793_v42 = vmul.f32 %v4663_v38, %v1777_v23  ;;  %v1800_v43 = vmul.f32 %v1798_v4, %v1794_v41 }
 0xee5   :  { %v1799_v32 = vmul.f32 %v1798_v4, %v1793_v42  ;;  %v5124_v45 = vadd.f32 %v1804_v3, %v1800_v43 }
 0xee7   :  { %v5122_v44 = vadd.f32 %v1804_v3, %v1799_v32  ;;  %v4091_v32 = vld [vmem:[%s5516_s5 + $0x38] sm:$0xff] }
 0xee8   :  { %4451 = vmatprep.subr.mxu0 %v4091_v32 }
 0xee9   :  { %4429 = vmatprep.mubr.msk.f32.mxu0 %vm160_vm4, %v5122_v44 }
 0xeea   :  { %4430 = vmatmul.mubr.msk.f32.vlgmr.msra.gmra.mxu0 %vm160_vm4, %v5124_v45 }
 0xeeb   :  { %4452 = vmatpush3.msra.mxu0 %v4091_v32 }
 0xfaa   :  { %v4431_v57 = vpop.f32.mrf.mxu0 }
 0xfab   :  { %v1893_v0 = vadd.f32 %v4431_v57, %v1814_v55  ;;  %v2039_v57 = vrot.slane %v4900_v63, %v2038_v53 }
 0xfac   :  { %v1887_v1 = vpop.f32.mrf.mxu0 }
 0xfad   :  { %v1899_v2 = vmul.f32 0.044715, %v1893_v0  ;;  %v1888_v5 = vadd.f32 %v1887_v1, %v1814_v55  ;;  %v1897_v21 = vmul.f32 0.5, %v1893_v0 }
 0xfaf   :  { %v1901_v6 = vmul.f32 %v1899_v2, %v1893_v0  ;;  %v1898_v7 = vmul.f32 0.044715, %v1888_v5  ;;  %v1896_v18 = vmul.f32 0.5, %v1888_v5 }
 0xfb1   :  { %v1903_v8 = vmul.f32 %v1901_v6, %v1893_v0  ;;  %v1900_v9 = vmul.f32 %v1898_v7, %v1888_v5 }
 0xfb3   :  { %v1905_v59 = vadd.f32 %v1903_v8, %v1893_v0  ;;  %v1902_v10 = vmul.f32 %v1900_v9, %v1888_v5  ;;  %v2044_v0 = vsub.s32 7, %v4888_v61  ;;  %v3950_v61 = vld [vmem:[%s5524_s11 + $0x18] sm:$0xff] }
 0xfb5   :  { %v1907_v11 = vmul.f32 0.7978846, %v1905_v59  ;;  %v1904_v12 = vadd.f32 %v1902_v10, %v1888_v5  ;;  %v2045_v7 = vrot.slane %v4900_v63, %v2044_v0  ;;  %v5207_v10 = vld [vmem:[%s5517_s9 + $0x8] sm:$0xff] }
 0xfb6   :  { %v2058_v63 = vrot.slane %v5207_v10, %v4895_v62 }
 0xfb7   :  { %4664 = vtanh.f32 %v1907_v11  ;;  %v1906_v13 = vmul.f32 0.7978846, %v1904_v12 }
 0xfb9   :  { %4666 = vtanh.f32 %v1906_v13 }
 0xfc4   :  { %v4665_v14 = vpop.eup %4664 }
 0xfc5   :  { %v1911_v17 = vadd.f32 1.0, %v4665_v14 }
 0xfc6   :  { %v4667_v15 = vpop.eup %4666 }
 0xfc7   :  { %v1910_v19 = vadd.f32 1.0, %v4667_v15  ;;  %v1913_v24 = vmul.f32 %v1911_v17, %v1897_v21 }
 0xfc9   :  { %v1912_v23 = vmul.f32 %v1910_v19, %v1896_v18 }
 0xfcb   :  { %4448 = vmatprep.mubr.msk.f32.mxu1 %vm1926_vm9, %v1912_v23 }
 0xfcc   :  { %4449 = vmatmul.mubr.msk.f32.vlgmr.msra.gmra.mxu1 %vm1926_vm9, %v1913_v24 }
 0xfcd   :  { %4474 = vmatprep.mubr.msk.f32.mxu1 %vm4720_vm5, %v4719_v16 }
0x108c   :  { %v4450_v60 = vpop.f32.mrf.mxu1 }
0x108d   :  { %v2005_v58 = vadd.f32 %v4450_v60, %v1925_v26 }
0x108e   :  { %v1999_v27 = vpop.f32.mrf.mxu1 }
0x108f   :  { %v2000_v28 = vadd.f32 %v1999_v27, %v1925_v26  ;;  %v2009_v29 = vadd.f32 %v2005_v58, %v5124_v45  ;;  %v4089_v45 = vld [vmem:[%s5516_s5 + $0x28] sm:$0xff] }
0x1091   :  { %v2013_v30 = vsel %vm160_vm4, %v2009_v29, 0.0  ;;  %v2008_v31 = vadd.f32 %v2000_v28, %v5122_v44  ;;  %v4090_v44 = vld [vmem:[%s5516_s5 + $0x30] sm:$0xff] }
0x1092   :  { %2014 = vadd.xlane.f32.xlu1 %v2013_v30  ;;  %4453 = vmatprep.subr.mxu0 %v4090_v44 }
0x1093   :  { %v2010_v33 = vsel %vm160_vm4, %v2008_v31, 0.0  ;;  %4454 = vmatpush3.msra.mxu0 %v4090_v44 }
0x1094   :  { %2011 = vadd.xlane.f32.xlu0 %v2010_v33  ;;  %4455 = vmatprep.subr.mxu0 %v4089_v45 }
0x1095   :  { %4456 = vmatpush3.msra.mxu0 %v4089_v45 }
0x1096   :  { %4457 = vmatprep.subr.mxu0 %v4088_v46 }
0x1097   :  { %4458 = vmatpush3.msra.mxu0 %v4088_v46 }
0x1098   :  { %4462 = vmatprep.subr.mxu0 %v4719_v16 }
0x111b   :  { %v2015_v34 = vpop.xlane.xlu1 %2014 }
0x111c   :  { %v2017_v35 = vmul.f32 0.03125, %v2015_v34 }
0x111d   :  { %v2012_v36 = vpop.xlane.xlu0 %2011 }
0x111e   :  { %v2019_v39 = vsub.f32 %v2009_v29, %v2017_v35  ;;  %v2016_v4 = vmul.f32 0.03125, %v2012_v36 }
0x1120   :  { %v2018_v41 = vsub.f32 %v2008_v31, %v2016_v4  ;;  %v2021_v38 = vmul.f32 %v2019_v39, %v2019_v39 }
0x1122   :  { %v2025_v42 = vsel %vm160_vm4, %v2021_v38, 0.0  ;;  %v2020_v43 = vmul.f32 %v2018_v41, %v2018_v41 }
0x1123   :  { %2026 = vadd.xlane.f32.xlu1 %v2025_v42 }
0x1124   :  { %v2022_v3 = vsel %vm160_vm4, %v2020_v43, 0.0 }
0x1125   :  { %2023 = vadd.xlane.f32.xlu0 %v2022_v3 }
0x11ac   :  { %v2027_v47 = vpop.xlane.xlu1 %2026 }
0x11ad   :  { %v2029_v48 = vmul.f32 0.03125, %v2027_v47 }
0x11ae   :  { %v2024_v49 = vpop.xlane.xlu0 %2023 }
0x11af   :  { %v2031_v50 = vadd.f32 1e-12, %v2029_v48  ;;  %v2028_v51 = vmul.f32 0.03125, %v2024_v49 }
0x11b1   :  { %4668 = vrsqrt.f32 %v2031_v50  ;;  %v2030_v52 = vadd.f32 1e-12, %v2028_v51 }
0x11b3   :  { %4670 = vrsqrt.f32 %v2030_v52 }
0x11be   :  { %v4669_v55 = vpop.eup %4668 }
0x11bf   :  { %v2035_v1 = vmul.f32 %v4669_v55, %v2019_v39 }
0x11c0   :  { %v4671_v2 = vpop.eup %4670 }
0x11c1   :  { %v2034_v5 = vmul.f32 %v4671_v2, %v2018_v41  ;;  %v2041_v6 = vmul.f32 %v2039_v57, %v2035_v1 }
0x11c3   :  { %v2040_v8 = vmul.f32 %v2039_v57, %v2034_v5  ;;  %v5196_v59 = vadd.f32 %v2045_v7, %v2041_v6 }
0x11c5   :  { %v5194_v9 = vadd.f32 %v2045_v7, %v2040_v8 }
0x11c7   :  { %4459 = vmatprep.mubr.msk.f32.mxu0 %vm160_vm4, %v5194_v9 }
0x11c8   :  { %4460 = vmatmul.mubr.msk.f32.vlgmr.msra.gmra.mxu0 %vm160_vm4, %v5196_v59 }
0x11c9   :  { %4464 = vmatprep.mubr.msk.f32.mxu0 %vm4720_vm5, %v4719_v16 }
0x1288   :  { %v4461_v11 = vpop.f32.mrf.mxu0 }
0x1289   :  { %v5211_v12 = vadd.f32 %v4461_v11, %v2058_v63 }
0x128a   :  { %v2131_v13 = vpop.f32.mrf.mxu0 }
0x128b   :  { %v5213_v14 = vadd.f32 %v2131_v13, %v2058_v63  ;;  %2218 = vrot.lane.b32.xlu1 %v5211_v12, %s4721_s30 }
0x128d   :  { %2141 = vrot.lane.b32.xlu0 %v5213_v14, %s4721_s30 }
0x12fd   :  { %v2219_v17 = vpop.permute.xlu1 %2218 }
0x12ff   :  { %v2142_v15 = vpop.permute.xlu0 %2141 }
0x1300   :  { %4463 = vmatpush3.xpose.msk.msra.mxu0 %vm330_vm6, %v2142_v15 }
0x1301   :  { %4467 = vmatprep.subr.mxu0 %v4719_v16 }
0x1303   :  { %4465 = vmatmul.mubr.msk.f32.vlgmr.msra.gmra.mxu0 %vm330_vm6, %v5213_v14 }
0x1304   :  { %4468 = vmatpush3.xpose.msk.msra.mxu0 %vm330_vm6, %v2219_v17  ;;  %4469 = vmatprep.mubr.msk.f32.mxu0 %vm4720_vm5, %v4719_v16 }
0x1305   :  { %4477 = vmatprep.subr.mxu0 %v4719_v16 }
0x1307   :  { %4470 = vmatmul.mubr.msk.f32.vlgmr.msra.gmra.mxu0 %vm330_vm6, %v5211_v12 }
0x1308   :  { %4479 = vmatprep.mubr.msk.f32.mxu0 %vm4720_vm5, %v4719_v16 }
0x13c3   :  { %v2213_v62 = vpop.f32.mrf.mxu0 }
0x13c4   :  { %v2214_v18 = vadd.f32 %v2213_v62, %v4929_v20 }
0x13c5   :  { %v4466_v19 = vpop.f32.mrf.mxu0 }
0x13c6   :  { %v2294_v21 = vsel %vm330_vm6, %v2214_v18, -inf }
0x13c7   :  { %2295 = vmax.xlane.f32.xlu1 %v2294_v21  ;;  %v2290_v23 = vpop.f32.mrf.mxu0 }
0x13c8   :  { %v2291_v24 = vadd.f32 %v2290_v23, %v4932_v22 }
0x13c9   :  { %v4471_v26 = vpop.f32.mrf.mxu0 }
0x13ca   :  { %v2297_v60 = vsel %vm330_vm6, %v2291_v24, -inf }
0x13cb   :  { %2298 = vmax.xlane.f32.xlu0 %v2297_v60 }
0x13d8   :  { %2392 = vrot.lane.b32.xlu1 %v5211_v12, %s4723_s1 }
0x13dc   :  { %2470 = vrot.lane.b32.xlu1 %v5213_v14, %s4724_s14 }
0x13e1   :  { %2316 = vrot.lane.b32.xlu0 %v5213_v14, %s4723_s1 }
0x1450   :  { %v2296_v58 = vpop.xlane.xlu1 %2295 }
0x1451   :  { %v2300_v27 = vsub.f32 %v2214_v18, %v2296_v58 }
0x1453   :  { %v2302_v28 = vmul.f32 1.442695, %v2300_v27 }
0x1454   :  { %v2393_v29 = vpop.permute.xlu1 %2392  ;;  %v2299_v30 = vpop.xlane.xlu0 %2298 }
0x1455   :  { %4672 = vpow2.f32 %v2302_v28  ;;  %v2301_v31 = vsub.f32 %v2291_v24, %v2299_v30  ;;  %4478 = vmatpush3.msra.mxu0 %v2393_v29 }
0x1456   :  { %4487 = vmatprep.subr.mxu0 %v4719_v16 }
0x1457   :  { %v2304_v33 = vmul.f32 1.442695, %v2301_v31 }
0x1458   :  { %v2317_v34 = vpop.permute.xlu0 %2316  ;;  %v2471_v41 = vpop.permute.xlu1 %2470 }
0x1459   :  { %4674 = vpow2.f32 %v2304_v33  ;;  %4473 = vmatpush3.msra.mxu1 %v2317_v34 }
0x145a   :  { %4482 = vmatprep.subr.mxu1 %v4719_v16 }
0x1462   :  { %v4673_v35 = vpop.eup %4672 }
0x1463   :  { %v2306_v36 = vsel %vm330_vm6, %v4673_v35, 0.0 }
0x1464   :  { %2307 = vadd.xlane.f32.xlu0 %v2306_v36 }
0x1466   :  { %v4675_v39 = vpop.eup %4674 }
0x1467   :  { %v2309_v4 = vsel %vm330_vm6, %v4675_v39, 0.0 }
0x1468   :  { %2310 = vadd.xlane.f32.xlu1 %v2309_v4 }
0x1479   :  { %2468 = vrot.lane.b32.xlu1 %v5213_v14, %s4725_s15 }
0x147a   :  { %2548 = vrot.lane.b32.xlu0 %v5211_v12, %s4724_s14 }
0x147e   :  { %2546 = vrot.lane.b32.xlu0 %v5211_v12, %s4725_s15 }
0x14ed   :  { %v2308_v38 = vpop.xlane.xlu0 %2307 }
0x14ee   :  { %4676 = vrcp.f32 %v2308_v38 }
0x14f1   :  { %v2311_v42 = vpop.xlane.xlu1 %2310  ;;  %v2549_v44 = vpop.permute.xlu0 %2548 }
0x14f2   :  { %4678 = vrcp.f32 %v2311_v42 }
0x14f5   :  { %v2469_v46 = vpop.permute.xlu1 %2468  ;;  %v2547_v47 = vpop.permute.xlu0 %2546 }
0x14fb   :  { %v4677_v43 = vpop.eup %4676 }
0x14fc   :  { %v2313_v3 = vmul.f32 %v4677_v43, %v4673_v35 }
0x14fe   :  { %4475 = vmatmul.mubr.msk.f32.vlgmr.msra.gmra.mxu1 %vm330_vm6, %v2313_v3 }
0x14ff   :  { %v4679_v32 = vpop.eup %4678  ;;  %4483 = vmatpush3.xpose.msk.msra.mxu1 %vm330_vm6, %v2471_v41  ;;  %4484 = vmatprep.mubr.msk.f32.mxu1 %vm4720_vm5, %v4719_v16 }
0x1500   :  { %v2315_v45 = vmul.f32 %v4679_v32, %v4675_v39  ;;  %4492 = vmatprep.subr.mxu1 %v4719_v16 }
0x1502   :  { %4480 = vmatmul.mubr.msk.f32.vlgmr.msra.gmra.mxu0 %vm330_vm6, %v2315_v45  ;;  %4485 = vmatmul.mubr.msk.f32.vlgmr.msra.gmra.mxu1 %vm330_vm6, %v2469_v46 }
0x1503   :  { %4488 = vmatpush3.xpose.msk.msra.mxu0 %vm330_vm6, %v2549_v44  ;;  %4489 = vmatprep.mubr.msk.f32.mxu0 %vm4720_vm5, %v4719_v16 }
0x1504   :  { %4497 = vmatprep.subr.mxu0 %v4719_v16  ;;  %4494 = vmatprep.mubr.msk.f32.mxu1 %vm4720_vm5, %v4719_v16 }
0x1506   :  { %4490 = vmatmul.mubr.msk.f32.vlgmr.msra.gmra.mxu0 %vm330_vm6, %v2547_v47 }
0x1507   :  { %4499 = vmatprep.mubr.msk.f32.mxu0 %vm4720_vm5, %v4719_v16 }
0x15be   :  { %v5267_v48 = vpop.f32.mrf.mxu1 }
0x15c0   :  { %v4476_v49 = vpop.f32.mrf.mxu1 }
0x15c2   :  { %v5269_v50 = vpop.f32.mrf.mxu0  ;;  %v2542_v51 = vpop.f32.mrf.mxu1 }
0x15c3   :  { %v2543_v52 = vadd.f32 %v2542_v51, %v4929_v20 }
0x15c4   :  { %v4481_v55 = vpop.f32.mrf.mxu0  ;;  %v4486_v57 = vpop.f32.mrf.mxu1 }
0x15c5   :  { %v2624_v1 = vsel %vm330_vm6, %v2543_v52, -inf }
0x15c6   :  { %2625 = vmax.xlane.f32.xlu1 %v2624_v1  ;;  %v2620_v2 = vpop.f32.mrf.mxu0 }
0x15c7   :  { %v2621_v5 = vadd.f32 %v2620_v2, %v4932_v22 }
0x15c8   :  { %v4491_v6 = vpop.f32.mrf.mxu0 }
0x15c9   :  { %v2627_v7 = vsel %vm330_vm6, %v2621_v5, -inf }
0x15ca   :  { %2628 = vmax.xlane.f32.xlu0 %v2627_v7 }
0x15d7   :  { %2722 = vrot.lane.b32.xlu1 %v5211_v12, %s4726_s16 }
0x15db   :  { %2800 = vrot.lane.b32.xlu1 %v5213_v14, %s4727_s0 }
0x15e0   :  { %2646 = vrot.lane.b32.xlu0 %v5213_v14, %s4726_s16 }
0x164f   :  { %v2626_v8 = vpop.xlane.xlu1 %2625 }
0x1650   :  { %v2630_v63 = vsub.f32 %v2543_v52, %v2626_v8 }
0x1652   :  { %v2632_v11 = vmul.f32 1.442695, %v2630_v63 }
0x1653   :  { %v2723_v13 = vpop.permute.xlu1 %2722  ;;  %v2629_v15 = vpop.xlane.xlu0 %2628 }
0x1654   :  { %4680 = vpow2.f32 %v2632_v11  ;;  %v2631_v17 = vsub.f32 %v2621_v5, %v2629_v15  ;;  %4498 = vmatpush3.msra.mxu0 %v2723_v13 }
0x1655   :  { %4507 = vmatprep.subr.mxu0 %v4719_v16 }
0x1656   :  { %v2634_v62 = vmul.f32 1.442695, %v2631_v17 }
0x1657   :  { %v2647_v18 = vpop.permute.xlu0 %2646  ;;  %v2801_v26 = vpop.permute.xlu1 %2800 }
0x1658   :  { %4682 = vpow2.f32 %v2634_v62  ;;  %4493 = vmatpush3.msra.mxu1 %v2647_v18 }
0x1659   :  { %4502 = vmatprep.subr.mxu1 %v4719_v16 }
0x1661   :  { %v4681_v19 = vpop.eup %4680 }
0x1662   :  { %v2636_v21 = vsel %vm330_vm6, %v4681_v19, 0.0 }
0x1663   :  { %2637 = vadd.xlane.f32.xlu0 %v2636_v21 }
0x1665   :  { %v4683_v23 = vpop.eup %4682 }
0x1666   :  { %v2639_v24 = vsel %vm330_vm6, %v4683_v23, 0.0 }
0x1667   :  { %2640 = vadd.xlane.f32.xlu1 %v2639_v24 }
0x1678   :  { %2798 = vrot.lane.b32.xlu1 %v5213_v14, %s4728_s17 }
0x1679   :  { %2878 = vrot.lane.b32.xlu0 %v5211_v12, %s4727_s0 }
0x167d   :  { %2876 = vrot.lane.b32.xlu0 %v5211_v12, %s4728_s17 }
0x16ec   :  { %v2638_v60 = vpop.xlane.xlu0 %2637 }
0x16ed   :  { %4684 = vrcp.f32 %v2638_v60 }
0x16f0   :  { %v2641_v58 = vpop.xlane.xlu1 %2640  ;;  %v2879_v30 = vpop.permute.xlu0 %2878 }
0x16f1   :  { %4686 = vrcp.f32 %v2641_v58 }
0x16f4   :  { %v2799_v33 = vpop.permute.xlu1 %2798  ;;  %v2877_v34 = vpop.permute.xlu0 %2876 }
0x16fa   :  { %v4685_v27 = vpop.eup %4684 }
0x16fb   :  { %v2643_v28 = vmul.f32 %v4685_v27, %v4681_v19 }
0x16fd   :  { %4495 = vmatmul.mubr.msk.f32.vlgmr.msra.gmra.mxu1 %vm330_vm6, %v2643_v28 }
0x16fe   :  { %v4687_v29 = vpop.eup %4686  ;;  %4503 = vmatpush3.xpose.msk.msra.mxu1 %vm330_vm6, %v2801_v26  ;;  %4504 = vmatprep.mubr.msk.f32.mxu1 %vm4720_vm5, %v4719_v16 }
0x16ff   :  { %v2645_v31 = vmul.f32 %v4687_v29, %v4683_v23  ;;  %4512 = vmatprep.subr.mxu1 %v4719_v16 }
0x1701   :  { %4500 = vmatmul.mubr.msk.f32.vlgmr.msra.gmra.mxu0 %vm330_vm6, %v2645_v31  ;;  %4505 = vmatmul.mubr.msk.f32.vlgmr.msra.gmra.mxu1 %vm330_vm6, %v2799_v33 }
0x1702   :  { %4508 = vmatpush3.xpose.msk.msra.mxu0 %vm330_vm6, %v2879_v30  ;;  %4509 = vmatprep.mubr.msk.f32.mxu0 %vm4720_vm5, %v4719_v16 }
0x1703   :  { %4517 = vmatprep.subr.mxu0 %v4719_v16  ;;  %4514 = vmatprep.mubr.msk.f32.mxu1 %vm4720_vm5, %v4719_v16 }
0x1705   :  { %4510 = vmatmul.mubr.msk.f32.vlgmr.msra.gmra.mxu0 %vm330_vm6, %v2877_v34 }
0x1706   :  { %4519 = vmatprep.mubr.msk.f32.mxu0 %vm4720_vm5, %v4719_v16 }
0x17bd   :  { %v5307_v35 = vpop.f32.mrf.mxu1 }
0x17bf   :  { %v4496_v36 = vpop.f32.mrf.mxu1 }
0x17c1   :  { %v5309_v39 = vpop.f32.mrf.mxu0  ;;  %v2872_v4 = vpop.f32.mrf.mxu1 }
0x17c2   :  { %v2873_v41 = vadd.f32 %v2872_v4, %v4929_v20 }
0x17c3   :  { %v4501_v38 = vpop.f32.mrf.mxu0  ;;  %v4506_v42 = vpop.f32.mrf.mxu1 }
0x17c4   :  { %v2954_v43 = vsel %vm330_vm6, %v2873_v41, -inf }
0x17c5   :  { %2955 = vmax.xlane.f32.xlu1 %v2954_v43  ;;  %v2950_v3 = vpop.f32.mrf.mxu0 }
0x17c6   :  { %v2951_v32 = vadd.f32 %v2950_v3, %v4932_v22 }
0x17c7   :  { %v4511_v44 = vpop.f32.mrf.mxu0 }
0x17c8   :  { %v2957_v45 = vsel %vm330_vm6, %v2951_v32, -inf }
0x17c9   :  { %2958 = vmax.xlane.f32.xlu0 %v2957_v45 }
0x17d6   :  { %3052 = vrot.lane.b32.xlu1 %v5211_v12, %s4729_s18 }
0x17da   :  { %3130 = vrot.lane.b32.xlu1 %v5213_v14, %s4730_s19 }
0x17df   :  { %2976 = vrot.lane.b32.xlu0 %v5213_v14, %s4729_s18  ;;  %s5528_s18 = smov 24  }
0x184e   :  { %v2956_v46 = vpop.xlane.xlu1 %2955 }
0x184f   :  { %v2960_v47 = vsub.f32 %v2873_v41, %v2956_v46 }
0x1851   :  { %v2962_v49 = vmul.f32 1.442695, %v2960_v47 }
0x1852   :  { %v3053_v51 = vpop.permute.xlu1 %3052  ;;  %v2959_v52 = vpop.xlane.xlu0 %2958 }
0x1853   :  { %4688 = vpow2.f32 %v2962_v49  ;;  %v2961_v55 = vsub.f32 %v2951_v32, %v2959_v52  ;;  %4518 = vmatpush3.msra.mxu0 %v3053_v51  ;;  %v4120_v51 = vld [vmem:[%s5519_s6 + $0x30] sm:$0xff]  ;;  %v4119_v52 = vld [vmem:[%s5519_s6 + $0x28] sm:$0xff] }
0x1854   :  { %4527 = vmatprep.subr.mxu0 %v4719_v16 }
0x1855   :  { %v2964_v57 = vmul.f32 1.442695, %v2961_v55  ;;  %v4118_v55 = vld [vmem:[%s5519_s6 + $0x20] sm:$0xff] }
0x1856   :  { %v2977_v1 = vpop.permute.xlu0 %2976  ;;  %v3131_v8 = vpop.permute.xlu1 %3130 }
0x1857   :  { %4690 = vpow2.f32 %v2964_v57  ;;  %4513 = vmatpush3.msra.mxu1 %v2977_v1 }
0x1858   :  { %4522 = vmatprep.subr.mxu1 %v4719_v16 }
0x1860   :  { %v4689_v2 = vpop.eup %4688 }
0x1861   :  { %v2966_v5 = vsel %vm330_vm6, %v4689_v2, 0.0 }
0x1862   :  { %2967 = vadd.xlane.f32.xlu0 %v2966_v5 }
0x1864   :  { %v4691_v6 = vpop.eup %4690 }
0x1865   :  { %v2969_v7 = vsel %vm330_vm6, %v4691_v6, 0.0 }
0x1866   :  { %2970 = vadd.xlane.f32.xlu1 %v2969_v7 }
0x1877   :  { %3128 = vrot.lane.b32.xlu1 %v5213_v14, %s4731_s20 }
0x1878   :  { %3208 = vrot.lane.b32.xlu0 %v5211_v12, %s4730_s19 }
0x187c   :  { %3206 = vrot.lane.b32.xlu0 %v5211_v12, %s4731_s20 }
0x18eb   :  { %v2968_v63 = vpop.xlane.xlu0 %2967 }
0x18ec   :  { %4692 = vrcp.f32 %v2968_v63 }
0x18ef   :  { %v2971_v11 = vpop.xlane.xlu1 %2970  ;;  %v3209_v62 = vpop.permute.xlu0 %3208 }
0x18f0   :  { %4694 = vrcp.f32 %v2971_v11 }
0x18f3   :  { %v3129_v19 = vpop.permute.xlu1 %3128  ;;  %v3207_v21 = vpop.permute.xlu0 %3206 }
0x18f9   :  { %v4693_v13 = vpop.eup %4692 }
0x18fa   :  { %v2973_v15 = vmul.f32 %v4693_v13, %v4689_v2 }
0x18fc   :  { %4515 = vmatmul.mubr.msk.f32.vlgmr.msra.gmra.mxu1 %vm330_vm6, %v2973_v15 }
0x18fd   :  { %v4695_v17 = vpop.eup %4694  ;;  %4523 = vmatpush3.xpose.msk.msra.mxu1 %vm330_vm6, %v3131_v8  ;;  %4524 = vmatprep.mubr.msk.f32.mxu1 %vm4720_vm5, %v4719_v16 }
0x18fe   :  { %v2975_v18 = vmul.f32 %v4695_v17, %v4691_v6  ;;  %4532 = vmatprep.subr.mxu1 %v4719_v16 }
0x1900   :  { %4520 = vmatmul.mubr.msk.f32.vlgmr.msra.gmra.mxu0 %vm330_vm6, %v2975_v18  ;;  %4525 = vmatmul.mubr.msk.f32.vlgmr.msra.gmra.mxu1 %vm330_vm6, %v3129_v19 }
0x1901   :  { %4528 = vmatpush3.xpose.msk.msra.mxu0 %vm330_vm6, %v3209_v62  ;;  %4529 = vmatprep.mubr.msk.f32.mxu0 %vm4720_vm5, %v4719_v16 }
0x1902   :  { %4537 = vmatprep.subr.mxu0 %v4719_v16  ;;  %4534 = vmatprep.mubr.msk.f32.mxu1 %vm4720_vm5, %v4719_v16 }
0x1904   :  { %4530 = vmatmul.mubr.msk.f32.vlgmr.msra.gmra.mxu0 %vm330_vm6, %v3207_v21 }
0x1905   :  { %4539 = vmatprep.mubr.msk.f32.mxu0 %vm4720_vm5, %v4719_v16 }
0x19bc   :  { %v3048_v23 = vpop.f32.mrf.mxu1 }
0x19be   :  { %v4516_v24 = vpop.f32.mrf.mxu1 }
0x19c0   :  { %v3124_v26 = vpop.f32.mrf.mxu0  ;;  %v3202_v60 = vpop.f32.mrf.mxu1 }
0x19c1   :  { %v3203_v58 = vadd.f32 %v3202_v60, %v4929_v20 }
0x19c2   :  { %v4521_v27 = vpop.f32.mrf.mxu0  ;;  %v4526_v28 = vpop.f32.mrf.mxu1 }
0x19c3   :  { %v3284_v29 = vsel %vm330_vm6, %v3203_v58, -inf }
0x19c4   :  { %3285 = vmax.xlane.f32.xlu1 %v3284_v29  ;;  %v3280_v30 = vpop.f32.mrf.mxu0 }
0x19c5   :  { %v3281_v31 = vadd.f32 %v3280_v30, %v4932_v22 }
0x19c6   :  { %v4531_v33 = vpop.f32.mrf.mxu0 }
0x19c7   :  { %v3287_v34 = vsel %vm330_vm6, %v3281_v31, -inf }
0x19c8   :  { %3288 = vmax.xlane.f32.xlu0 %v3287_v34 }
0x1a4d   :  { %v3286_v36 = vpop.xlane.xlu1 %3285 }
0x1a4e   :  { %v3290_v4 = vsub.f32 %v3203_v58, %v3286_v36 }
0x1a50   :  { %v3292_v41 = vmul.f32 1.442695, %v3290_v4 }
0x1a51   :  { %v3289_v38 = vpop.xlane.xlu0 %3288 }
0x1a52   :  { %4696 = vpow2.f32 %v3292_v41  ;;  %v3291_v42 = vsub.f32 %v3281_v31, %v3289_v38  ;;  %v4126_v38 = vld [vmem:[%s5520_s7 + $0x30] sm:$0xff] }
0x1a54   :  { %v3294_v43 = vmul.f32 1.442695, %v3291_v42  ;;  %v4125_v42 = vld [vmem:[%s5520_s7 + $0x28] sm:$0xff] }
0x1a56   :  { %4698 = vpow2.f32 %v3294_v43  ;;  %v4124_v43 = vld [vmem:[%s5520_s7 + $0x20] sm:$0xff] }
0x1a5f   :  { %v4697_v20 = vpop.eup %4696 }
0x1a60   :  { %v3296_v3 = vsel %vm330_vm6, %v4697_v20, 0.0 }
0x1a61   :  { %3297 = vadd.xlane.f32.xlu0 %v3296_v3 }
0x1a63   :  { %v4699_v32 = vpop.eup %4698 }
0x1a64   :  { %v3299_v44 = vsel %vm330_vm6, %v4699_v32, 0.0 }
0x1a65   :  { %3300 = vadd.xlane.f32.xlu1 %v3299_v44 }
0x1a76   :  { %3382 = vrot.lane.b32.xlu1 %v5211_v12, %s4732_s21 }
0x1a77   :  { %3306 = vrot.lane.b32.xlu0 %v5213_v14, %s4732_s21 }
0x1a7a   :  { %3460 = vrot.lane.b32.xlu1 %v5307_v35, %s4733_s22 }
0x1a7b   :  { %3462 = vrot.lane.b32.xlu0 %v5309_v39, %s4733_s22  ;;  %v4121_v39 = vld [vmem:[%s5519_s6 + $0x38] sm:$0xff] }
0x1a7e   :  { %3468 = vrot.lane.b32.xlu1 %v3048_v23, %s4734_s23 }
0x1a7f   :  { %3470 = vrot.lane.b32.xlu0 %v3124_v26, %s4734_s23 }
0x1aea   :  { %v3298_v22 = vpop.xlane.xlu0 %3297 }
0x1aeb   :  { %4700 = vrcp.f32 %v3298_v22 }
0x1aee   :  { %v3301_v45 = vpop.xlane.xlu1 %3300  ;;  %v3307_v46 = vpop.permute.xlu0 %3306 }
0x1aef   :  { %4702 = vrcp.f32 %v3301_v45  ;;  %4533 = vmatpush3.msra.mxu1 %v3307_v46 }
0x1af0   :  { %4542 = vmatprep.subr.mxu1 %v4121_v39 }
0x1af2   :  { %v3383_v12 = vpop.permute.xlu1 %3382  ;;  %v3463_v7 = vpop.permute.xlu0 %3462 }
0x1af3   :  { %4538 = vmatpush3.msra.mxu0 %v3383_v12  ;;  %v3483_v62 = vsel %vm330_vm6, %v5269_v50, %v3463_v7  ;;  %v3609_v12 = vrot.slane %v5207_v10, %v1797_v37  ;;  %v4137_v37 = vld [vmem:[%s5521_s8 + $0x78] sm:$0xff]  ;;  %v4130_v7 = vld [vmem:[%s5521_s8 + $0x40] sm:$0xff] }
0x1af6   :  { %v3461_v6 = vpop.permute.xlu1 %3460  ;;  %v3471_v11 = vpop.permute.xlu0 %3470 }
0x1af7   :  { %v3482_v63 = vsel %vm330_vm6, %v5267_v48, %v3461_v6  ;;  %v3485_v18 = vsel %vm1672_vm7, %v3483_v62, %v3471_v11  ;;  %v3496_v48 = vrot.slane %v5207_v10, %v1684_v56  ;;  %v4131_v6 = vld [vmem:[%s5521_s8 + $0x48] sm:$0xff] }
0x1af8   :  { %v4701_v47 = vpop.eup %4700 }
0x1af9   :  { %v3303_v14 = vmul.f32 %v4701_v47, %v4697_v20 }
0x1afa   :  { %v3469_v8 = vpop.permute.xlu1 %3468 }
0x1afb   :  { %4535 = vmatmul.mubr.msk.f32.vlgmr.msra.gmra.mxu1 %vm330_vm6, %v3303_v14  ;;  %v3484_v13 = vsel %vm1672_vm7, %v3482_v63, %v3469_v8  ;;  %v3626_v8 = vrot.slane %v5207_v10, %v1813_v54 }
0x1afc   :  { %v4703_v35 = vpop.eup %4702  ;;  %4543 = vmatpush3.msra.mxu1 %v4121_v39  ;;  %v3615_v39 = vrot.slane %v5207_v10, %v1803_v40  ;;  %v4135_v40 = vld [vmem:[%s5521_s8 + $0x68] sm:$0xff] }
0x1afd   :  { %v3305_v49 = vmul.f32 %v4703_v35, %v4699_v32  ;;  %4544 = vmatprep.subr.mxu1 %v4120_v51 }
0x1afe   :  { %4545 = vmatpush3.msra.mxu1 %v4120_v51 }
0x1aff   :  { %4540 = vmatmul.mubr.msk.f32.vlgmr.msra.gmra.mxu0 %vm330_vm6, %v3305_v49  ;;  %4546 = vmatprep.subr.mxu1 %v4119_v52 }
0x1b00   :  { %4547 = vmatpush3.msra.mxu1 %v4119_v52 }
0x1b01   :  { %4548 = vmatprep.subr.mxu1 %v4118_v55 }
0x1b02   :  { %4549 = vmatpush3.msra.mxu1 %v4118_v55 }
0x1b03   :  { %4564 = vmatprep.subr.mxu1 %v4137_v37 }
0x1bbb   :  { %v3378_v57 = vpop.f32.mrf.mxu1 }
0x1bbc   :  { %3476 = vrot.lane.b32.xlu1 %v3378_v57, %s5528_s18  ;;  %v4136_v57 = vld [vmem:[%s5521_s8 + $0x70] sm:$0xff] }
0x1bbd   :  { %v4536_v1 = vpop.f32.mrf.mxu1 }
0x1bbe   :  { %v4134_v1 = vld [vmem:[%s5521_s8 + $0x60] sm:$0xff] }
0x1bbf   :  { %v3454_v2 = vpop.f32.mrf.mxu0 }
0x1bc0   :  { %3478 = vrot.lane.b32.xlu0 %v3454_v2, %s5528_s18  ;;  %v4133_v2 = vld [vmem:[%s5521_s8 + $0x58] sm:$0xff] }
0x1bc1   :  { %v4541_v5 = vpop.f32.mrf.mxu0 }
0x1bc2   :  { %v4132_v5 = vld [vmem:[%s5521_s8 + $0x50] sm:$0xff] }
0x1c2e   :  { %v3477_v15 = vpop.permute.xlu1 %3476 }
0x1c2f   :  { %v3486_v17 = vsel %vm1675_vm8, %v3484_v13, %v3477_v15 }
0x1c30   :  { %4550 = vmatprep.mubr.msk.f32.mxu1 %vm160_vm4, %v3486_v17 }
0x1c32   :  { %v3479_v19 = vpop.permute.xlu0 %3478 }
0x1c33   :  { %v3487_v21 = vsel %vm1675_vm8, %v3485_v18, %v3479_v19 }
0x1c34   :  { %4551 = vmatmul.mubr.msk.f32.vlgmr.msra.gmra.mxu1 %vm160_vm4, %v3487_v21 }
0x1c35   :  { %4565 = vmatpush3.msra.mxu1 %v4137_v37 }
0x1c36   :  { %4566 = vmatprep.subr.mxu1 %v4136_v57 }
0x1c37   :  { %4567 = vmatpush3.msra.mxu1 %v4136_v57 }
0x1c38   :  { %4568 = vmatprep.subr.mxu1 %v4135_v40 }
0x1c39   :  { %4569 = vmatpush3.msra.mxu1 %v4135_v40  ;;  %v3851_v40 = vrot.slane %v5207_v10, %v2038_v53  ;;  %v3949_v53 = vld [vmem:[%s5524_s11 + $0x10] sm:$0xff] }
0x1c3a   :  { %4570 = vmatprep.subr.mxu1 %v4134_v1 }
0x1c3b   :  { %4571 = vmatpush3.msra.mxu1 %v4134_v1 }
0x1c3c   :  { %4572 = vmatprep.subr.mxu1 %v4133_v2 }
0x1c3d   :  { %4573 = vmatpush3.msra.mxu1 %v4133_v2 }
0x1c3e   :  { %4574 = vmatprep.subr.mxu1 %v4132_v5 }
0x1c3f   :  { %4575 = vmatpush3.msra.mxu1 %v4132_v5  ;;  %v3857_v5 = vrot.slane %v5207_v10, %v2044_v0  ;;  %v3948_v0 = vld [vmem:[%s5524_s11 + $0x8] sm:$0xff] }
0x1c40   :  { %4576 = vmatprep.subr.mxu1 %v4131_v6 }
0x1c41   :  { %4577 = vmatpush3.msra.mxu1 %v4131_v6 }
0x1c42   :  { %4578 = vmatprep.subr.mxu1 %v4130_v7 }
0x1c43   :  { %4579 = vmatpush3.msra.mxu1 %v4130_v7 }
0x1cf4   :  { %v4552_v23 = vpop.f32.mrf.mxu1 }
0x1cf5   :  { %v3575_v24 = vadd.f32 %v4552_v23, %v3496_v48 }
0x1cf6   :  { %v3569_v26 = vpop.f32.mrf.mxu1 }
0x1cf7   :  { %v3579_v60 = vadd.f32 %v3575_v24, %v5196_v59  ;;  %v3570_v58 = vadd.f32 %v3569_v26, %v3496_v48 }
0x1cf9   :  { %v3578_v27 = vadd.f32 %v3570_v58, %v5194_v9  ;;  %v3583_v50 = vsel %vm160_vm4, %v3579_v60, 0.0  ;;  %v4127_v9 = vld [vmem:[%s5520_s7 + $0x38] sm:$0xff] }
0x1cfa   :  { %3584 = vadd.xlane.f32.xlu0 %v3583_v50  ;;  %4553 = vmatprep.subr.mxu0 %v4127_v9 }
0x1cfb   :  { %v3580_v28 = vsel %vm160_vm4, %v3578_v27, 0.0  ;;  %4554 = vmatpush3.msra.mxu0 %v4127_v9 }
0x1cfc   :  { %3581 = vadd.xlane.f32.xlu1 %v3580_v28  ;;  %4555 = vmatprep.subr.mxu0 %v4126_v38 }
0x1cfd   :  { %4556 = vmatpush3.msra.mxu0 %v4126_v38 }
0x1cfe   :  { %4557 = vmatprep.subr.mxu0 %v4125_v42 }
0x1cff   :  { %4558 = vmatpush3.msra.mxu0 %v4125_v42 }
0x1d00   :  { %4559 = vmatprep.subr.mxu0 %v4124_v43 }
0x1d01   :  { %4560 = vmatpush3.msra.mxu0 %v4124_v43 }
0x1d02   :  { %4583 = vmatprep.subr.mxu0 %v4719_v16 }
0x1d83   :  { %v3585_v29 = vpop.xlane.xlu0 %3584 }
0x1d84   :  { %v3587_v30 = vmul.f32 0.03125, %v3585_v29 }
0x1d85   :  { %v3582_v31 = vpop.xlane.xlu1 %3581 }
0x1d86   :  { %v3589_v33 = vsub.f32 %v3579_v60, %v3587_v30  ;;  %v3586_v34 = vmul.f32 0.03125, %v3582_v31 }
0x1d88   :  { %v3588_v56 = vsub.f32 %v3578_v27, %v3586_v34  ;;  %v3591_v36 = vmul.f32 %v3589_v33, %v3589_v33 }
0x1d8a   :  { %v3595_v4 = vsel %vm160_vm4, %v3591_v36, 0.0  ;;  %v3590_v41 = vmul.f32 %v3588_v56, %v3588_v56 }
0x1d8b   :  { %3596 = vadd.xlane.f32.xlu1 %v3595_v4 }
0x1d8c   :  { %v3592_v59 = vsel %vm160_vm4, %v3590_v41, 0.0 }
0x1d8d   :  { %3593 = vadd.xlane.f32.xlu0 %v3592_v59 }
0x1e14   :  { %v3597_v20 = vpop.xlane.xlu1 %3596 }
0x1e15   :  { %v3599_v3 = vmul.f32 0.03125, %v3597_v20 }
0x1e16   :  { %v3594_v32 = vpop.xlane.xlu0 %3593 }
0x1e17   :  { %v3601_v44 = vadd.f32 1e-12, %v3599_v3  ;;  %v3598_v22 = vmul.f32 0.03125, %v3594_v32 }
0x1e19   :  { %4704 = vrsqrt.f32 %v3601_v44  ;;  %v3600_v45 = vadd.f32 1e-12, %v3598_v22 }
0x1e1b   :  { %4706 = vrsqrt.f32 %v3600_v45 }
0x1e26   :  { %v4705_v46 = vpop.eup %4704 }
0x1e27   :  { %v3605_v47 = vmul.f32 %v4705_v46, %v3589_v33  ;;  %v3738_v33 = vrot.slane %v5207_v10, %v1924_v25  ;;  %v3947_v10 = vld [vmem:[%s5524_s11] sm:$0xff] }
0x1e28   :  { %v4707_v14 = vpop.eup %4706 }
0x1e29   :  { %v3604_v35 = vmul.f32 %v4707_v14, %v3588_v56  ;;  %v3611_v49 = vmul.f32 %v3609_v12, %v3605_v47  ;;  %v3863_v47 = vld [vmem:[%s5523_s10 + $0x18] sm:$0xff]  ;;  %v3862_v14 = vld [vmem:[%s5523_s10 + $0x10] sm:$0xff] }
0x1e2b   :  { %v3610_v51 = vmul.f32 %v3609_v12, %v3604_v35  ;;  %v3617_v55 = vadd.f32 %v3615_v39, %v3611_v49  ;;  %v3951_v12 = vld [vmem:[%s5522_s2] sm:$0x3]  ;;  %v3861_v35 = vld [vmem:[%s5523_s10 + $0x8] sm:$0xff] }
0x1e2c   :  { %v3860_v49 = vld [vmem:[%s5523_s10] sm:$0xff] }
0x1e2d   :  { %v3616_v52 = vadd.f32 %v3615_v39, %v3610_v51 }
0x1e2f   :  { %4561 = vmatprep.mubr.msk.f32.mxu0 %vm160_vm4, %v3616_v52 }
0x1e30   :  { %4562 = vmatmul.mubr.msk.f32.vlgmr.msra.gmra.mxu0 %vm160_vm4, %v3617_v55 }
0x1e31   :  { %4591 = vmatprep.mubr.msk.f32.mxu0 %vm4720_vm5, %v4719_v16  ;;  %4584 = vmatpush3.msra.mxu0 %v3863_v47 }
0x1e32   :  { %4585 = vmatprep.subr.mxu0 %v4719_v16 }
0x1e33   :  { %4586 = vmatpush3.msra.mxu0 %v3862_v14 }
0x1e34   :  { %4587 = vmatprep.subr.mxu0 %v4719_v16 }
0x1e35   :  { %4588 = vmatpush3.msra.mxu0 %v3861_v35 }
0x1e36   :  { %4589 = vmatprep.subr.mxu0 %v4719_v16 }
0x1e37   :  { %4590 = vmatpush3.msra.mxu0 %v3860_v49 }
0x1e38   :  { %4594 = vmatprep.subr.mxu0 %v4719_v16 }
0x1ef0   :  { %v4563_v63 = vpop.f32.mrf.mxu0 }
0x1ef1   :  { %v3705_v11 = vadd.f32 %v4563_v63, %v3626_v8 }
0x1ef2   :  { %v3699_v13 = vpop.f32.mrf.mxu0 }
0x1ef3   :  { %v3711_v15 = vmul.f32 0.044715, %v3705_v11  ;;  %v3700_v17 = vadd.f32 %v3699_v13, %v3626_v8  ;;  %v3709_v29 = vmul.f32 0.5, %v3705_v11 }
0x1ef5   :  { %v3713_v62 = vmul.f32 %v3711_v15, %v3705_v11  ;;  %v3710_v18 = vmul.f32 0.044715, %v3700_v17  ;;  %v3708_v54 = vmul.f32 0.5, %v3700_v17 }
0x1ef7   :  { %v3715_v19 = vmul.f32 %v3713_v62, %v3705_v11  ;;  %v3712_v21 = vmul.f32 %v3710_v18, %v3700_v17  ;;  %v4140_v62 = vld [vmem:[%s5515_s4 + $0x12] ss:$0 sm:$0xff] }
0x1ef9   :  { %v3717_v48 = vadd.f32 %v3715_v19, %v3705_v11  ;;  %v3714_v23 = vmul.f32 %v3712_v21, %v3700_v17 }
0x1efb   :  { %v3719_v24 = vmul.f32 0.7978846, %v3717_v48  ;;  %v3716_v26 = vadd.f32 %v3714_v23, %v3700_v17  ;;  %v4142_v23 = vld [vmem:[%s5515_s4 + $0x13] ss:$0 sm:$0xff] }
0x1efd   :  { %4708 = vtanh.f32 %v3719_v24  ;;  %v3718_v60 = vmul.f32 0.7978846, %v3716_v26 }
0x1eff   :  { %4710 = vtanh.f32 %v3718_v60 }
0x1f0a   :  { %v4709_v58 = vpop.eup %4708 }
0x1f0b   :  { %v3723_v50 = vadd.f32 1.0, %v4709_v58 }
0x1f0c   :  { %v4711_v27 = vpop.eup %4710 }
0x1f0d   :  { %v3722_v28 = vadd.f32 1.0, %v4711_v27  ;;  %v3725_v31 = vmul.f32 %v3723_v50, %v3709_v29 }
0x1f0f   :  { %v3724_v30 = vmul.f32 %v3722_v28, %v3708_v54 }
0x1f11   :  { %4580 = vmatprep.mubr.msk.f32.mxu1 %vm1926_vm9, %v3724_v30 }
0x1f12   :  { %4581 = vmatmul.mubr.msk.f32.vlgmr.msra.gmra.mxu1 %vm1926_vm9, %v3725_v31 }
0x1fd2   :  { %v4582_v34 = vpop.f32.mrf.mxu1 }
0x1fd3   :  { %v3817_v56 = vadd.f32 %v4582_v34, %v3738_v33 }
0x1fd4   :  { %v3811_v36 = vpop.f32.mrf.mxu1 }
0x1fd5   :  { %v3821_v4 = vadd.f32 %v3817_v56, %v3617_v55  ;;  %v3812_v41 = vadd.f32 %v3811_v36, %v3738_v33 }
0x1fd7   :  { %v3820_v59 = vadd.f32 %v3812_v41, %v3616_v52  ;;  %v3825_v9 = vsel %vm160_vm4, %v3821_v4, 0.0 }
0x1fd8   :  { %3826 = vadd.xlane.f32.xlu0 %v3825_v9 }
0x1fd9   :  { %v3822_v38 = vsel %vm160_vm4, %v3820_v59, 0.0 }
0x1fda   :  { %3823 = vadd.xlane.f32.xlu1 %v3822_v38 }
0x2061   :  { %v3827_v42 = vpop.xlane.xlu0 %3826 }
0x2062   :  { %v3829_v43 = vmul.f32 0.03125, %v3827_v42 }
0x2063   :  { %v3824_v20 = vpop.xlane.xlu1 %3823 }
0x2064   :  { %v3831_v3 = vsub.f32 %v3821_v4, %v3829_v43  ;;  %v3828_v32 = vmul.f32 0.03125, %v3824_v20 }
0x2066   :  { %v3830_v44 = vsub.f32 %v3820_v59, %v3828_v32  ;;  %v3833_v22 = vmul.f32 %v3831_v3, %v3831_v3 }
0x2068   :  { %v3837_v25 = vsel %vm160_vm4, %v3833_v22, 0.0  ;;  %v3832_v45 = vmul.f32 %v3830_v44, %v3830_v44 }
0x2069   :  { %3838 = vadd.xlane.f32.xlu0 %v3837_v25 }
0x206a   :  { %v3834_v46 = vsel %vm160_vm4, %v3832_v45, 0.0 }
0x206b   :  { %3835 = vadd.xlane.f32.xlu1 %v3834_v46 }
0x207f   :  { %3955 = vperm.xlu0 %4623, %v3951_v12  }
0x20f2   :  { %v3839_v39 = vpop.xlane.xlu0 %3838 }
0x20f3   :  { %v3841_v51 = vmul.f32 0.03125, %v3839_v39 }
0x20f4   :  { %v3836_v52 = vpop.xlane.xlu1 %3835 }
0x20f5   :  { %v3843_v55 = vadd.f32 1e-12, %v3841_v51  ;;  %v3840_v37 = vmul.f32 0.03125, %v3836_v52 }
0x20f7   :  { %4712 = vrsqrt.f32 %v3843_v55  ;;  %v3842_v57 = vadd.f32 1e-12, %v3840_v37 }
0x20f9   :  { %4714 = vrsqrt.f32 %v3842_v57 }
0x20fa   :  { %v3956_v24 = vpop.permute.xlu0 %3955 }
0x20fb   :  { %v3962_v26 = vmul.f32 %v4142_v23, %v3956_v24 }
0x2104   :  { %v4713_v1 = vpop.eup %4712 }
0x2105   :  { %v3847_v2 = vmul.f32 %v4713_v1, %v3831_v3 }
0x2106   :  { %v4715_v6 = vpop.eup %4714 }
0x2107   :  { %v3846_v7 = vmul.f32 %v4715_v6, %v3830_v44  ;;  %v3853_v8 = vmul.f32 %v3851_v40, %v3847_v2 }
0x2109   :  { %v3852_v63 = vmul.f32 %v3851_v40, %v3846_v7  ;;  %v3859_v11 = vadd.f32 %v3857_v5, %v3853_v8 }
0x210b   :  { %v3858_v13 = vadd.f32 %v3857_v5, %v3852_v63  ;;  %v3871_v15 = vrot.slane %v3859_v11, 7 }
0x210d   :  { %v3873_v17 = vsel %vm3872_vm10, %v3871_v15, %v3858_v13 }
0x210e   :  { %4592 = vmatmul.mubr.msk.f32.vlgmr.msra.gmra.mxu0 %vm160_vm4, %v3873_v17 }
0x210f   :  { %4602 = vmatprep.mubr.msk.f32.mxu0 %vm4720_vm5, %v4719_v16  ;;  %4595 = vmatpush3.msra.mxu0 %v3950_v61 }
0x2110   :  { %4596 = vmatprep.subr.mxu0 %v4719_v16 }
0x2111   :  { %4597 = vmatpush3.msra.mxu0 %v3949_v53 }
0x2112   :  { %4598 = vmatprep.subr.mxu0 %v4719_v16 }
0x2113   :  { %4599 = vmatpush3.msra.mxu0 %v3948_v0 }
0x2114   :  { %4600 = vmatprep.subr.mxu0 %v4719_v16  ;;  %v4144_v16 = vld [vmem:[%s5515_s4 + $0x14] ss:$0 sm:$0xff] }
0x2115   :  { %4601 = vmatpush3.msra.mxu0 %v3947_v10 }
0x21ce   :  { %v3942_v18 = vpop.f32.mrf.mxu0 }
0x21cf   :  { %v3943_v19 = vadd.f32 %v4140_v62, %v3942_v18 }
0x21d0   :  { %v4593_v21 = vpop.f32.mrf.mxu0 }
0x21d1   :  { %4716 = vtanh.f32 %v3943_v19 }
0x21de   :  { %v4717_v48 = vpop.eup %4716 }
0x21df   :  { %4603 = vmatmul.mubr.msk.f32.vlgmr.msra.gmra.mxu0 %vm160_vm4, %v4717_v48 }
0x229f   :  { %v4032_v60 = vpop.f32.mrf.mxu0 }
0x22a0   :  { %v4033_v58 = vadd.f32 %v4032_v60, %v3962_v26 }
0x22a1   :  { %v4604_v27 = vpop.f32.mrf.mxu0 }
0x22a2   :  { %v4041_v50 = vadd.f32 %v4144_v16, %v4033_v58 }
0x22a4   :  { %4043 = vst.msk [vmem:[%s5525_s12] sm:$0x3] %vm4042_vm11, %v4041_v50 }

</bundles_post_ra>
